<compile_context>
chip_gen: v7x
topology: tpu7x:2x2x1
jax: 0.10.0
libtpu: 0.0.40
codegen_flags: <defaults>
</compile_context>

<pallas_src>
import jax
import jax.numpy as jnp
from jax.experimental import pallas as pl
from jax.experimental.pallas import tpu as pltpu


def _round_up(v: int, m: int) -> int:
    return (v + m - 1) // m * m


def basic_block1_kernel(thr_ref, x_ref, w2_ref, b2_ref, w3_ref, b3_ref, o_ref):
    # fc2: cast the streamed f32 x tile to bf16 (VPU filler under the MXU),
    # bf16 x bf16 matmul with f32 accumulation, bias + relu in f32 on the VPU.
    x = x_ref[...].astype(jnp.bfloat16)
    h = jnp.dot(x, w2_ref[...], preferred_element_type=jnp.float32)
    h = jnp.maximum(h + b2_ref[...], 0.0)

    # Soft threshold.  h >= 0 after relu, so sign(h)*relu(|h|-thr) reduces to
    # where(h > 0, max(h - thr, 0), 0)  (exact for any sign of thr).
    thr = thr_ref[0]
    h = jnp.where(h > 0.0, jnp.maximum(h - thr, 0.0), 0.0)

    # fc3 + relu: second MXU pass in bf16, f32 accumulate and f32 epilogue.
    y = jnp.dot(h.astype(jnp.bfloat16), w3_ref[...],
                preferred_element_type=jnp.float32)
    o_ref[...] = jnp.maximum(y + b3_ref[...], 0.0)


def prepare_params(params):
    """One-time preprocessing of the PyTorch-shaped params.

    Call once at init (not per forward call).  Transposes the weights,
    zero-pads the non-contracting dims to multiples of 128 and casts the
    matmul operands to bf16; biases / threshold stay f32.
    """
    pa = params["w2"].shape[0]
    out = params["w3"].shape[0]
    pa_p = _round_up(pa, 128)     # fc2 output width (lane-dense intermediate)
    out_p = _round_up(out, 128)   # fc3 output width (lane-dense store)

    w2_t = jnp.zeros((pa, pa_p), jnp.bfloat16).at[:, :pa].set(
        params["w2"].T.astype(jnp.bfloat16))
    w3_t = jnp.zeros((pa_p, out_p), jnp.bfloat16).at[:pa, :out].set(
        params["w3"].T.astype(jnp.bfloat16))
    b2 = jnp.zeros((1, pa_p), jnp.float32).at[:, :pa].set(
        params["b2"].reshape(1, pa).astype(jnp.float32))
    b3 = jnp.zeros((1, out_p), jnp.float32).at[:, :out].set(
        params["b3"].reshape(1, out).astype(jnp.float32))

    return {
        "soft_thr": params["soft_thr"].reshape(1).astype(jnp.float32),
        "w2_t": w2_t, "b2": b2, "w3_t": w3_t, "b3": b3,
        "in_features": pa, "out_features": out,
    }


def _choose_batch_tile(B: int, tile_b: int) -> int:
    # Multiple of 16 (bf16 sublane packing); capped at ceil(B/2) so the
    # "parallel" batch axis has >= 2 grid steps whenever B allows it
    # (lets v7x shard across both TensorCores).
    half = _round_up(max(-(-B // 2), 16), 16)
    return max(16, min(_round_up(tile_b, 16), half))


def basic_block1(x, prepped, *, tile_b=512):
    """x: (B, PA) float32.  prepped: output of prepare_params()."""
    B, PA = x.shape
    assert PA == prepped["in_features"], "input feature dim mismatch"
    PA_p = prepped["w2_t"].shape[1]
    OUT_p = prepped["w3_t"].shape[1]
    OUT = prepped["out_features"]

    tb = _choose_batch_tile(B, tile_b)
    B_p = _round_up(B, tb)
    if B_p != B:
        # Small batch-only zero-pad; production callers should pass a batch
        # that is a multiple of the tile to skip this extra pass over x.
        x = jnp.pad(x, ((0, B_p - B), (0, 0)))
    grid = (B_p // tb,)

    out_p = pl.pallas_call(
        basic_block1_kernel,
        out_shape=jax.ShapeDtypeStruct((B_p, OUT_p), jnp.float32),
        grid_spec=pltpu.PrefetchScalarGridSpec(
            num_scalar_prefetch=0,
            grid=grid,
            in_specs=[
                pl.BlockSpec(memory_space=pltpu.SMEM),           # soft_thr (1,)
                pl.BlockSpec((tb, PA), lambda i: (i, 0)),        # x tile, f32, streamed
                pl.BlockSpec((PA, PA_p), lambda i: (0, 0)),      # W2^T resident bf16
                pl.BlockSpec((1, PA_p), lambda i: (0, 0)),       # b2
                pl.BlockSpec((PA_p, OUT_p), lambda i: (0, 0)),   # W3^T resident bf16
                pl.BlockSpec((1, OUT_p), lambda i: (0, 0)),      # b3
            ],
            out_specs=pl.BlockSpec((tb, OUT_p), lambda i: (i, 0)),
        ),
        compiler_params=pltpu.CompilerParams(
            dimension_semantics=("parallel",),
        ),
    )(prepped["soft_thr"], x, prepped["w2_t"], prepped["b2"],
      prepped["w3_t"], prepped["b3"])

    return out_p[:B, :OUT]


def basic_block1_ref(x, params):
    """Pure-JAX f32 reference matching the PyTorch forward."""
    h = x @ params["w2"].T + params["b2"]
    h = jnp.maximum(h, 0.0)
    h = jnp.sign(h) * jnp.maximum(jnp.abs(h) - params["soft_thr"][0], 0.0)
    y = h @ params["w3"].T + params["b3"]
    return jnp.maximum(y, 0.0)


def init_params(key, pa, out):
    k2w, k2b, k3w, k3b = jax.random.split(key, 4)
    return {
        "soft_thr": jnp.array([0.01], dtype=jnp.float32),
        "w2": 0.02 * jax.random.normal(k2w, (pa, pa), dtype=jnp.float32),
        "b2": 0.02 * jax.random.normal(k2b, (pa,), dtype=jnp.float32),
        "w3": 0.02 * jax.random.normal(k3w, (out, pa), dtype=jnp.float32),
        "b3": 0.02 * jax.random.normal(k3b, (out,), dtype=jnp.float32),
    }


if __name__ == "__main__":
    # Module's real feature sizes (pa=881, fc3 out 256), small demo batch.
    B, PA, OUT = 48, 881, 256
    key = jax.random.PRNGKey(0)
    kx, kp = jax.random.split(key)
    x = jax.random.normal(kx, (B, PA), dtype=jnp.float32)
    params = init_params(kp, PA, OUT)

    # Weight prep is hoisted out of the call path: done exactly once here.
    prepped = prepare_params(params)

    # Default tile -> tb=32 for B=48 (two grid steps even at this tiny batch).
    out = basic_block1(x, prepped)
    out = jax.block_until_ready(out)

    ref = basic_block1_ref(x, params)
    assert out.shape == (B, OUT)
    max_err = float(jnp.max(jnp.abs(out - ref)))
    # bf16 matmul operands with f32 accumulation: ~1e-2 abs error at these scales.
    assert max_err < 5e-2, f"mismatch vs reference: max abs err {max_err}"
    print("KERNEL_OK")
</pallas_src>

<mosaic_0001>
module attributes {stable_mosaic.version = 11 : i64} {
  func.func @basic_block1_kernel(%arg0: i32, %arg1: memref<1xf32, #tpu.memory_space<smem>>, %arg2: memref<32x881xf32, #tpu.memory_space<vmem>>, %arg3: memref<881x896xbf16, #tpu.memory_space<vmem>>, %arg4: memref<1x896xf32, #tpu.memory_space<vmem>>, %arg5: memref<896x256xbf16, #tpu.memory_space<vmem>>, %arg6: memref<1x256xf32, #tpu.memory_space<vmem>>, %arg7: memref<32x256xf32, #tpu.memory_space<vmem>>) attributes {dimension_semantics = [#tpu.dimension_semantics<parallel>], iteration_bounds = array<i64: 2>, scalar_prefetch = 0 : i64, scratch_operands = 0 : i64, tpu.core_type = #tpu.core_type<tc>, window_params = [{transform_indices = @transform_0, window_bounds = array<i64: 1>}, {transform_indices = @transform_1, window_bounds = array<i64: 32, 881>}, {pipeline_mode = #tpu.pipeline_mode<synchronous>, transform_indices = @transform_2, window_bounds = array<i64: 881, 896>}, {pipeline_mode = #tpu.pipeline_mode<synchronous>, transform_indices = @transform_3, window_bounds = array<i64: 1, 896>}, {pipeline_mode = #tpu.pipeline_mode<synchronous>, transform_indices = @transform_4, window_bounds = array<i64: 896, 256>}, {pipeline_mode = #tpu.pipeline_mode<synchronous>, transform_indices = @transform_5, window_bounds = array<i64: 1, 256>}, {transform_indices = @transform_6, window_bounds = array<i64: 32, 256>}]} {
    %c0 = arith.constant 0 : index
    %c0_0 = arith.constant 0 : index
    %0 = vector.load %arg2[%c0, %c0_0] : memref<32x881xf32, #tpu.memory_space<vmem>>, vector<32x881xf32>
    %1 = arith.truncf %0 : vector<32x881xf32> to vector<32x881xbf16>
    %c0_1 = arith.constant 0 : index
    %c0_2 = arith.constant 0 : index
    %2 = vector.load %arg3[%c0_1, %c0_2] : memref<881x896xbf16, #tpu.memory_space<vmem>>, vector<881x896xbf16>
    %cst = arith.constant dense<0.000000e+00> : vector<32x896xf32>
    %3 = tpu.matmul %1, %2, %cst {dimension_numbers = #tpu.dot_dimension_numbers<[1], [0], [0], [1], [0, 0, 1, 1], [], []>} : vector<32x881xbf16>, vector<881x896xbf16>, vector<32x896xf32> -> vector<32x896xf32>
    %c0_3 = arith.constant 0 : index
    %c0_4 = arith.constant 0 : index
    %4 = vector.load %arg4[%c0_3, %c0_4] : memref<1x896xf32, #tpu.memory_space<vmem>>, vector<1x896xf32>
    %5 = vector.broadcast %4 : vector<1x896xf32> to vector<32x896xf32>
    %6 = arith.addf %3, %5 : vector<32x896xf32>
    %cst_5 = arith.constant 0.000000e+00 : f32
    %7 = vector.broadcast %cst_5 : f32 to vector<32x896xf32>
    %8 = arith.maximumf %6, %7 : vector<32x896xf32>
    %c0_6 = arith.constant 0 : index
    %9 = memref.load %arg1[%c0_6] : memref<1xf32, #tpu.memory_space<smem>>
    %cst_7 = arith.constant 0.000000e+00 : f32
    %10 = vector.broadcast %cst_7 : f32 to vector<32x896xf32>
    %11 = arith.cmpf ogt, %8, %10 : vector<32x896xf32>
    %12 = vector.broadcast %9 : f32 to vector<32x896xf32>
    %13 = arith.subf %8, %12 : vector<32x896xf32>
    %cst_8 = arith.constant 0.000000e+00 : f32
    %14 = vector.broadcast %cst_8 : f32 to vector<32x896xf32>
    %15 = arith.maximumf %13, %14 : vector<32x896xf32>
    %cst_9 = arith.constant 0.000000e+00 : f32
    %16 = vector.broadcast %cst_9 : f32 to vector<32x896xf32>
    %17 = arith.select %11, %15, %16 : vector<32x896xi1>, vector<32x896xf32>
    %18 = arith.truncf %17 : vector<32x896xf32> to vector<32x896xbf16>
    %c0_10 = arith.constant 0 : index
    %c0_11 = arith.constant 0 : index
    %19 = vector.load %arg5[%c0_10, %c0_11] : memref<896x256xbf16, #tpu.memory_space<vmem>>, vector<896x256xbf16>
    %cst_12 = arith.constant dense<0.000000e+00> : vector<32x256xf32>
    %20 = tpu.matmul %18, %19, %cst_12 {dimension_numbers = #tpu.dot_dimension_numbers<[1], [0], [0], [1], [0, 0, 1, 1], [], []>} : vector<32x896xbf16>, vector<896x256xbf16>, vector<32x256xf32> -> vector<32x256xf32>
    %c0_13 = arith.constant 0 : index
    %c0_14 = arith.constant 0 : index
    %21 = vector.load %arg6[%c0_13, %c0_14] : memref<1x256xf32, #tpu.memory_space<vmem>>, vector<1x256xf32>
    %22 = vector.broadcast %21 : vector<1x256xf32> to vector<32x256xf32>
    %23 = arith.addf %20, %22 : vector<32x256xf32>
    %cst_15 = arith.constant 0.000000e+00 : f32
    %24 = vector.broadcast %cst_15 : f32 to vector<32x256xf32>
    %25 = arith.maximumf %23, %24 : vector<32x256xf32>
    %c0_16 = arith.constant 0 : index
    %c0_17 = arith.constant 0 : index
    %26 = vector.load %arg7[%c0_16, %c0_17] : memref<32x256xf32, #tpu.memory_space<vmem>>, vector<32x256xf32>
    tpu.vector_store %arg7[%c0_16, %c0_17], %25 {strides = array<i32>} : memref<32x256xf32, #tpu.memory_space<vmem>>, vector<32x256xf32>,
    return
  }
  func.func @transform_0(%arg0: i32) -> i32 {
    %c0_i32 = arith.constant 0 : i32
    %c0_i32_0 = arith.constant 0 : i32
    return %c0_i32 : i32
  }
  func.func @transform_1(%arg0: i32) -> (i32, i32) {
    %c0_i32 = arith.constant 0 : i32
    %c0_i32_0 = arith.constant 0 : i32
    return %arg0, %c0_i32 : i32, i32
  }
  func.func @transform_2(%arg0: i32) -> (i32, i32) {
    %c0_i32 = arith.constant 0 : i32
    %c0_i32_0 = arith.constant 0 : i32
    %c0_i32_1 = arith.constant 0 : i32
    return %c0_i32, %c0_i32_0 : i32, i32
  }
  func.func @transform_3(%arg0: i32) -> (i32, i32) {
    %c0_i32 = arith.constant 0 : i32
    %c0_i32_0 = arith.constant 0 : i32
    %c0_i32_1 = arith.constant 0 : i32
    return %c0_i32, %c0_i32_0 : i32, i32
  }
  func.func @transform_4(%arg0: i32) -> (i32, i32) {
    %c0_i32 = arith.constant 0 : i32
    %c0_i32_0 = arith.constant 0 : i32
    %c0_i32_1 = arith.constant 0 : i32
    return %c0_i32, %c0_i32_0 : i32, i32
  }
  func.func @transform_5(%arg0: i32) -> (i32, i32) {
    %c0_i32 = arith.constant 0 : i32
    %c0_i32_0 = arith.constant 0 : i32
    %c0_i32_1 = arith.constant 0 : i32
    return %c0_i32, %c0_i32_0 : i32, i32
  }
  func.func @transform_6(%arg0: i32) -> (i32, i32) {
    %c0_i32 = arith.constant 0 : i32
    %c0_i32_0 = arith.constant 0 : i32
    return %arg0, %c0_i32 : i32, i32
  }
}

</mosaic_0001>

<bundles_post_ra>
// kernel: tpu_custom_call.1
= control target key start
LH: loop header
LB: loop body
LE: loop exit
PB: predicated region body
PF: predicated region fallthrough
CT: control target
= control target key end

     0   :  { %s7590_s0 = inlined_call_operand.<no memory space> [shape: f32[1], index: 0, kind: input, shape index: {}]   ;;  %s7591_s1 = inlined_call_operand.hbm [shape: f32[64,881], index: 1, kind: input, shape index: {}]   ;;  %s7592_s2 = inlined_call_operand.hbm [shape: bf16[881,896], index: 2, kind: input, shape index: {}]   ;;  %s7593_s3 = inlined_call_operand.hbm [shape: f32[1,896], index: 3, kind: input, shape index: {}]   ;;  %s7594_s4 = inlined_call_operand.hbm [shape: bf16[896,256], index: 4, kind: input, shape index: {}]   ;;  %s7595_s5 = inlined_call_operand.hbm [shape: f32[1,256], index: 5, kind: input, shape index: {}]   ;;  %s7596_s6 = inlined_call_operand.hbm [shape: f32[64,256], index: 6, kind: output, shape index: {}]  }
   0x1   :  { %11 = sst [smem:[#allocation2]] %s7590_s0 }
   0x2   :  { %12 = vsyncpa [#allocation4], 0 }
   0x3   :  { %14 = vsyncpa [#allocation4 + $0x1], 0 }
   0x4   :  { %15 = vsyncpa [#allocation7], 0 }
   0x5   :  { %16 = vsyncpa [#allocation10], 0 }
   0x6   :  { %17 = vsyncpa [#allocation5], 0 }
   0x7   :  { %19 = vsyncpa [#allocation5 + $0x1], 0  ;;  %s6822_s23 = smov 0   ;;  %s6824_s24 = smov 0  }
   0x8   :  { %s6826_s25 = smov 0   ;;  %s6828_s26 = smov 0  }
   0x9 LB: > { %s6843_s0 = sadd.s32 4294967295, %s6767_s26   ;;  %s4907_s27 = sadd.s32 4294967294, %s6767_s26   ;;  %s6767_s26 = sphi %s6828_s26, %s7675_s26   ;;  %s6763_s25 = sphi %s6826_s25, %s7674_s25   ;;  %s6759_s24 = sphi %s6824_s24, %s7673_s24   ;;  %s6755_s23 = sphi %s6822_s23, %s7672_s23  }
   0xa   : > { %p66_p0 = scmp.ne.s32.totalorder %s6759_s24, %s6755_s23  ;;  %p7597_p1 = scmp.eq.s32.totalorder %s6843_s0, 0 }
   0xb   : > { %p180_p3 = scmp.eq.s32.totalorder %s4907_s27, 1  ;;  %p4908_p5 = scmp.ge.s32.totalorder %s6767_s26, 1 }
   0xc   : > { %p6852_p4 = por %p7597_p1, %p66_p0  ;;  %p187_p7 = scmp.lt.s32.totalorder %s6767_s26, 3 }
   0xd   : > { %p6857_p6 = por %p180_p3, %p66_p0  ;;  %s6769_s7 = smov [#allocation6]  }
   0xe   : > { %s7600_s28 = scalar_select %p6852_p4, 1, 0 }
   0xf   : > { %s7601_s29 = scalar_select %p6857_p6, 1, 0 }
  0x10   : > { %p6862_p8 = pnand %p4908_p5, %p187_p7  ;;  %s202_s8 = sshll.u32 %s6769_s7, 4  ;;  %s6866_s8 = int_to_ptr.vmem [resolvable:$true] %s202_s8 }
  0x11   : > { %s6770_s10 = smov [#allocation9]   ;;  %s6551_s14 = scalar_lea.hbm %s7592_s2, 49728 }
  0x12   : > { %s7602_s30 = scalar_select %p6862_p8, 1, 0 }
  0x13   : > { %p5750_p9 = pneg %p6862_p8  ;;  %s226_s11 = sshll.u32 %s6770_s10, 4  ;;  %s6877_s11 = int_to_ptr.vmem [resolvable:$true] %s226_s11 }
  0x14   : > { %p6552_p12 = scmp.ne.s32.totalorder %s7592_s2, %s6551_s14  ;;  %p6558_p5 = scmp.lt.u32.totalorder %s6551_s14, %s7592_s2 }
  0x15   : > { %p6873_p11 = pnand %p5750_p9, %p7597_p1 }
  0x17   : > { %p6887_p13 = pneg %p6873_p11 }
  0x19   : > { %p6554_p0 = pnand %p6887_p13, %p6552_p12 }
  0x1b   : > { %p6555_p3 = pneg %p6554_p0 }
  0x1d   : > { %p6560_p7 = pnand %p6558_p5, %p6555_p3 }
  0x1f   : > { %6563 = shalt.err (!%p6560_p7)
}
  0x20   : > { %s6564_s20 = scalar_lea.vmem %s6866_s8, 49728  ;;  %p6572_p2 = scmp.lt.s32.totalorder %s6866_s8, %s6866_s8 }
  0x21   : > { %p6565_p9 = scmp.ne.s32.totalorder %s6866_s8, %s6564_s20  ;;  %p6573_p6 = scmp.lt.s32.totalorder %s6564_s20, %s6564_s20 }
  0x23   : > { %p6567_p10 = pnand %p6565_p9, %p6887_p13  ;;  %p6574_p12 = por %p6573_p6, %p6572_p2 }
  0x25   : > { %p6568_p1 = pneg %p6567_p10 }
  0x27   : > { %p6575_p0 = pnand %p6574_p12, %p6568_p1 }
  0x29   : > { %6578 = shalt.err (!%p6575_p0)
}
  0x2a   : > { %s6771_s21 = smov 448   ;;  %s6772_s22 = smov 28  }
  0x2b   : > { %5753 = dma.hbm_to_vmem [thread:$0]  (!%p6873_p11), %s7592_s2, 49728, %s6866_s8, [#allocation7], %s6771_s21, %s6771_s21, %s6772_s22  }
  0x2c   : > { %s6579_s13 = scalar_lea.hbm %s7594_s4, 14336 }
  0x2d   : > { %p6580_p2 = scmp.ne.s32.totalorder %s7594_s4, %s6579_s13  ;;  %p6586_p10 = scmp.lt.u32.totalorder %s6579_s13, %s7594_s4 }
  0x2f   : > { %p6582_p1 = pnand %p6580_p2, %p6887_p13 }
  0x31   : > { %p6583_p6 = pneg %p6582_p1 }
  0x33   : > { %p6588_p3 = pnand %p6586_p10, %p6583_p6 }
  0x35   : > { %6591 = shalt.err (!%p6588_p3)
}
  0x36   : > { %s6592_s8 = scalar_lea.vmem %s6877_s11, 14336  ;;  %p6600_p12 = scmp.lt.s32.totalorder %s6877_s11, %s6877_s11 }
  0x37   : > { %p6593_p5 = scmp.ne.s32.totalorder %s6877_s11, %s6592_s8  ;;  %p6601_p0 = scmp.lt.s32.totalorder %s6592_s8, %s6592_s8 }
  0x39   : > { %p6595_p7 = pnand %p6593_p5, %p6887_p13  ;;  %p6602_p2 = por %p6601_p0, %p6600_p12 }
  0x3b   : > { %p6596_p9 = pneg %p6595_p7 }
  0x3d   : > { %p6603_p1 = pnand %p6602_p2, %p6596_p9 }
  0x3f   : > { %6606 = shalt.err (!%p6603_p1)
}
  0x40   : > { %s6773_s19 = smov 128   ;;  %s6774_s20 = smov 8  }
  0x41   : > { %5759 = dma.hbm_to_vmem [thread:$0]  (!%p6873_p11), %s7594_s4, 14336, %s6877_s11, [#allocation10], %s6773_s19, %s6773_s19, %s6774_s20  }
  0x42   : > { %s6775_s27 = smov [#allocation8]   ;;  %s6776_s10 = smov [#allocation11]  }
  0x43   : > { %s216_s7 = sshll.u32 %s6775_s27, 4  ;;  %s240_s12 = sshll.u32 %s6776_s10, 4  ;;  %s217_s7 = int_to_ptr.vmem [resolvable:$true] %s216_s7  ;;  %s6931_s12 = int_to_ptr.vmem [resolvable:$true] %s240_s12 }
  0x44   : > { %s6607_s15 = scalar_lea.hbm %s7593_s3, 112 }
  0x45   : > { %p6608_p6 = scmp.ne.s32.totalorder %s7593_s3, %s6607_s15  ;;  %p6614_p5 = scmp.lt.u32.totalorder %s6607_s15, %s7593_s3 }
  0x47   : > { %p6610_p10 = pnand %p6608_p6, %p6887_p13 }
  0x49   : > { %p6611_p3 = pneg %p6610_p10 }
  0x4b   : > { %p6616_p7 = pnand %p6614_p5, %p6611_p3 }
  0x4d   : > { %6619 = shalt.err (!%p6616_p7)
}
  0x4e   : > { %s6620_s19 = scalar_lea.vmem %s217_s7, 112  ;;  %s6627_s20 = scalar_lea.vmem %s217_s7, 128 }
  0x4f   : > { %p6621_p9 = scmp.ne.s32.totalorder %s217_s7, %s6620_s19  ;;  %p6628_p2 = scmp.lt.s32.totalorder %s217_s7, %s217_s7 }
  0x50   : > { %p6629_p1 = scmp.lt.s32.totalorder %s6627_s20, %s6620_s19 }
  0x51   : > { %p6623_p12 = pnand %p6621_p9, %p6887_p13 }
  0x52   : > { %p6630_p4 = por %p6629_p1, %p6628_p2 }
  0x53   : > { %p6624_p0 = pneg %p6623_p12 }
  0x55   : > { %p6631_p8 = pnand %p6630_p4, %p6624_p0 }
  0x57   : > { %6634 = shalt.err (!%p6631_p8)
}
  0x58   : > { %5756 = dma.hbm_to_vmem [thread:$0]  (!%p6873_p11), %s7593_s3, 112, %s217_s7, [#allocation7]  }
  0x59   : > { %s6635_s13 = scalar_lea.hbm %s7595_s5, 32 }
  0x5a   : > { %p6636_p6 = scmp.ne.s32.totalorder %s7595_s5, %s6635_s13  ;;  %p6642_p4 = scmp.lt.u32.totalorder %s6635_s13, %s7595_s5 }
  0x5c   : > { %p6638_p10 = pnand %p6636_p6, %p6887_p13 }
  0x5e   : > { %p6639_p3 = pneg %p6638_p10 }
  0x60   : > { %p6644_p8 = pnand %p6642_p4, %p6639_p3 }
  0x62   : > { %6647 = shalt.err (!%p6644_p8)
}
  0x63   : > { %s6648_s7 = scalar_lea.vmem %s6931_s12, 32  ;;  %p6656_p12 = scmp.lt.s32.totalorder %s6931_s12, %s6931_s12 }
  0x64   : > { %p6649_p5 = scmp.ne.s32.totalorder %s6931_s12, %s6648_s7  ;;  %p6657_p0 = scmp.lt.s32.totalorder %s6648_s7, %s6648_s7 }
  0x66   : > { %p6651_p7 = pnand %p6649_p5, %p6887_p13  ;;  %p6658_p2 = por %p6657_p0, %p6656_p12 }
  0x68   : > { %p6652_p9 = pneg %p6651_p7 }
  0x6a   : > { %p6659_p1 = pnand %p6658_p2, %p6652_p9 }
  0x6c   : > { %6662 = shalt.err (!%p6659_p1)
}
  0x6d   : > { %5762 = dma.hbm_to_vmem [thread:$0]  (!%p6873_p11), %s7595_s5, 32, %s6931_s12, [#allocation10]  }
  0x6e   : > { %s6975_s17 = sadd.s32 1, %s6767_s26   ;;  %s53_s19 = sadd.s32 1, %s6763_s25 }
  0x6f   : > { %s50_s9 = ssub.s32 %s6767_s26, %s6975_s17  ;;  %p60_p6 = scmp.ne.s32.totalorder %s6763_s25, %s6759_s24 }
  0x70   : > { %p51_p13 = scmp.eq.s32.totalorder %s50_s9, 0  ;;  %p61_p10 = scmp.eq.s32.totalorder %s6767_s26, 0 }
  0x71   : > { %p7605_p4 = scmp.eq.s32.totalorder %s6843_s0, 1  ;;  %p5775_p5 = scmp.lt.s32.totalorder %s6767_s26, 2 }
  0x72   : > { %s6984_s20 = scalar_select %p51_p13, %s6763_s25, %s53_s19  }
  0x73   : > { %p62_p3 = por %p61_p10, %p60_p6  ;;  %p6988_p8 = por %p7605_p4, %p60_p6 }
  0x74   : > { %s251_s22 = sand.u32 1, %s6763_s25   ;;  %s5728_s12 = smul.u32 3584, %s6767_s26 }
  0x75   : > { %s5727_s27 = smul.u32 224, %s251_s22  ;;  %p6995_p11 = pnand %p5775_p5, %p62_p3 }
  0x76   : > { %s7002_s15 = scalar_lea.hbm %s7591_s1, %s5728_s12  ;;  %s7006_s7 = scalar_lea.sflag [#allocation4], %s251_s22 }
  0x77   : > { %s255_s16 = scalar_lea.vmem [#allocation3], %s5727_s27  ;;  %s6663_s8 = scalar_lea.hbm %s7002_s15, 3584 }
  0x78   : > { %s263_s18 = sshll.u32 %s255_s16, 4  ;;  %p6664_p7 = scmp.ne.s32.totalorder %s7002_s15, %s6663_s8  ;;  %s7004_s18 = int_to_ptr.vmem [resolvable:$true] %s263_s18 }
  0x79   : > { %p6665_p9 = pneg %p6995_p11  ;;  %s6668_s19 = scalar_lea.hbm %s7591_s1, 7168 }
  0x7a   : > { %p6669_p2 = scmp.lt.u32.totalorder %s7002_s15, %s7591_s1  ;;  %p6670_p1 = scmp.lt.u32.totalorder %s6668_s19, %s6663_s8 }
  0x7b   : > { %p6666_p12 = pnand %p6665_p9, %p6664_p7  ;;  %p6672_p6 = scmp.lt.u32.totalorder %s6663_s8, %s7002_s15 }
  0x7c   : > { %p6671_p13 = por %p6670_p1, %p6669_p2 }
  0x7d   : > { %p6667_p0 = pneg %p6666_p12 }
  0x7e   : > { %p6673_p10 = por %p6672_p6, %p6671_p13 }
  0x80   : > { %p6674_p3 = pnand %p6673_p10, %p6667_p0 }
  0x82   : > { %6677 = shalt.err (!%p6674_p3)
}
  0x83   : > { %s6678_s22 = scalar_lea.vmem %s7004_s18, 3584  ;;  %s6777_s27 = smov [#allocation3]  }
  0x84   : > { %p6679_p4 = scmp.ne.s32.totalorder %s7004_s18, %s6678_s22  ;;  %s6683_s14 = sshll.u32 %s6777_s27, 4  ;;  %s6684_s14 = int_to_ptr.vmem [resolvable:$false] %s6683_s14 }
  0x85   : > { %s6685_s16 = scalar_lea.vmem %s6684_s14, 7168  ;;  %p6686_p12 = scmp.lt.s32.totalorder %s7004_s18, %s6684_s14 }
  0x86   : > { %p6681_p5 = pnand %p6679_p4, %p6665_p9  ;;  %p6687_p2 = scmp.lt.s32.totalorder %s6685_s16, %s6678_s22 }
  0x88   : > { %p6682_p7 = pneg %p6681_p5  ;;  %p6688_p1 = por %p6687_p2, %p6686_p12 }
  0x8a   : > { %p6689_p13 = pnand %p6688_p1, %p6682_p7 }
  0x8c   : > { %6692 = shalt.err (!%p6689_p13)
}
  0x8d   : > { %s6778_s8 = smov 896   ;;  %s6779_s11 = smov 56  }
  0x8e   : > { %5766 = dma.hbm_to_vmem [thread:$0]  (!%p6995_p11), %s7002_s15, 3584, %s7004_s18, %s7006_s7, %s6778_s8, %s6778_s8, %s6779_s11  }
  0x8f   : > { %p7608_p9 = scmp.ne.s32.totalorder %s7602_s30, 0 }
  0x90   : > { %s7037_s9 = sand.u32 (!%p7608_p9), 1, %s6759_s24   ;;  %p7609_p0 = scmp.ne.s32.totalorder (!%p7608_p9), %s7600_s28, 0 }
  0x91   : > { %275 = sbr.rel (%p7608_p9) target bundleno = 1173 (0x495), region = 44  ;;  %s278_s12 = scalar_lea.sflag (!%p7608_p9), [#allocation4], %s7037_s9 }
  0x92   : > { %s5729_s19 = smul.u32 (!%p7608_p9), 224, %s7037_s9 }
  0x94   : > { %s7041_s13 = scalar_lea.vmem (!%p7608_p9), [#allocation3], %s5729_s19 }
  0x98   : > { %6738 = dma.done.wait (%p7609_p0), %s278_s12, 3584  }
  0x99   : > { %6740 = vsyncadd (%p7609_p0), %s278_s12, 4294963712  ;;  %p7610_p11 = scmp.eq.s32.totalorder %s6843_s0, 0 }
  0x9b   : > { %6742 = dma.done.wait (%p7610_p11), [#allocation7], 49840   ;;  %p7611_p6 = pmov %p7610_p11 }
  0x9d   : > { %6744 = vsyncadd (%p7611_p6), [#allocation7], 4294917456  ;;  %p7612_p10 = pmov %p7611_p6 }
  0x9e   : > { %p7613_p3 = pmov %p7611_p6 }
  0x9f   : > { %6746 = dma.done.wait (%p7612_p10), [#allocation10], 14368  }
  0xa0   : > { %6748 = vsyncadd (%p7613_p3), [#allocation10], 4294952928  ;;  %v5826_v0 = vld [vmem:[#allocation6 + $0x4] ss:$28 sps:$4 sm:$0xff]   ;;  %v5829_v2 = vld [vmem:[#allocation6 + $0x3c] ss:$28 sps:$4 sm:$0xff]  }
  0xa1   : > { %v5828_v1 = vld [vmem:[#allocation6] ss:$28 sps:$4 sm:$0xff]   ;;  %2881 = vmatprep.subr.bf16.mxu0 %v5826_v0  ;;  %v5831_v3 = vld [vmem:[#allocation6 + $0x38] ss:$28 sps:$4 sm:$0xff]   ;;  %v5834_v5 = vld [vmem:[#allocation6 + $0x70] ss:$28 sps:$4 sm:$0xff]  }
  0xa2   : > { %2882 = vmatpush1.bf16.msra.mxu0 %v5828_v1  ;;  %v5832_v4 = vld [vmem:[#allocation6 + $0x74] ss:$28 sps:$4 sm:$0xff]   ;;  %v5835_v6 = vld [vmem:[#allocation6 + $0xac] ss:$28 sps:$4 sm:$0xff]   ;;  %v5838_v8 = vld [vmem:[#allocation6 + $0xe4] ss:$28 sps:$4 sm:$0xff]  }
  0xa3   : > { %2883 = vmatprep.subr.bf16.mxu0 %v5829_v2  ;;  %v5837_v7 = vld [vmem:[#allocation6 + $0xa8] ss:$28 sps:$4 sm:$0xff]   ;;  %v5840_v9 = vld [vmem:[#allocation6 + $0xe0] ss:$28 sps:$4 sm:$0xff]   ;;  %v5843_v11 = vld [vmem:[#allocation6 + $0x118] ss:$28 sps:$4 sm:$0xff]  }
  0xa4   : > { %v5841_v10 = vld [vmem:[#allocation6 + $0x11c] ss:$28 sps:$4 sm:$0xff]   ;;  %v5844_v12 = vld [vmem:[#allocation6 + $0x154] ss:$28 sps:$4 sm:$0xff]   ;;  %v330_v13 = vld [vmem:[%s7041_s13 + $0x8] sm:$0xff]  ;;  %vm2857_vm0 = vcmask 1040384  }
  0xa5   : > { %v337_v14 = vld [vmem:[%s7041_s13 + $0x40] sm:$0xff]  ;;  %v5846_v16 = vld [vmem:[#allocation6 + $0x150] ss:$28 sps:$4 sm:$0xff]   ;;  %v5853_v21 = vld [vmem:[#allocation6 + $0x1fc] ss:$28 sps:$4 sm:$0xff]   ;;  %vm2850_vm1 = vcmask 924672  }
  0xa6   : > { %2884 = vmatpush1.bf16.msra.mxu0 %v5831_v3  ;;  %v7057_v15 = vpack.c.bf16 %v337_v14, %v330_v13  ;;  %v5847_v17 = vld [vmem:[#allocation6 + $0x18c] ss:$28 sps:$4 sm:$0xff]   ;;  %v5850_v19 = vld [vmem:[#allocation6 + $0x1c4] ss:$28 sps:$4 sm:$0xff]   ;;  %v5855_v22 = vld [vmem:[#allocation6 + $0x1f8] ss:$28 sps:$4 sm:$0xff]  }
  0xa7   : > { %2885 = vmatprep.subr.bf16.mxu0 %v5832_v4  ;;  %v5849_v18 = vld [vmem:[#allocation6 + $0x188] ss:$28 sps:$4 sm:$0xff]   ;;  %v5852_v20 = vld [vmem:[#allocation6 + $0x1c0] ss:$28 sps:$4 sm:$0xff]   ;;  %v5856_v25 = vld [vmem:[#allocation6 + $0x234] ss:$28 sps:$4 sm:$0xff]  }
  0xa8   : > { %2913 = vmatprep.mubr.bf16.mxu0 %v7057_v15  ;;  %v5901_v23 = vld [vmem:[#allocation6 + $0x38c] ss:$28 sps:$4 sm:$0xff]   ;;  %v5907_v26 = vld [vmem:[#allocation6 + $0x3c4] ss:$28 sps:$4 sm:$0xff]   ;;  %v5913_v30 = vld [vmem:[#allocation6 + $0x3fc] ss:$28 sps:$4 sm:$0xff]  }
  0xa9   : > { %v5903_v24 = vld [vmem:[#allocation6 + $0x388] ss:$28 sps:$4 sm:$0xff]   ;;  %3146 = vmatprep.subr.bf16.mxu1 %v5901_v23  ;;  %v5909_v27 = vld [vmem:[#allocation6 + $0x3c0] ss:$28 sps:$4 sm:$0xff]   ;;  %v5858_v28 = vld [vmem:[#allocation6 + $0x230] ss:$28 sps:$4 sm:$0xff]  }
  0xaa   : > { %2886 = vmatpush1.bf16.msra.mxu0 %v5834_v5  ;;  %3147 = vmatpush1.bf16.msra.mxu1 %v5903_v24  ;;  %v5859_v29 = vld [vmem:[#allocation6 + $0x26c] ss:$28 sps:$4 sm:$0xff]   ;;  %v5915_v31 = vld [vmem:[#allocation6 + $0x3f8] ss:$28 sps:$4 sm:$0xff]   ;;  %v5862_v34 = vld [vmem:[#allocation6 + $0x2a4] ss:$28 sps:$4 sm:$0xff]  }
  0xab   : > { %2887 = vmatprep.subr.bf16.mxu0 %v5835_v6  ;;  %3148 = vmatprep.subr.bf16.mxu1 %v5907_v26  ;;  %v5861_v32 = vld [vmem:[#allocation6 + $0x268] ss:$28 sps:$4 sm:$0xff]   ;;  %v5919_v33 = vld [vmem:[#allocation6 + $0x434] ss:$28 sps:$4 sm:$0xff]   ;;  %v5864_v36 = vld [vmem:[#allocation6 + $0x2a0] ss:$28 sps:$4 sm:$0xff]  }
  0xac   : > { %v5921_v35 = vld [vmem:[#allocation6 + $0x430] ss:$28 sps:$4 sm:$0xff]   ;;  %v5865_v38 = vld [vmem:[#allocation6 + $0x2dc] ss:$28 sps:$4 sm:$0xff]   ;;  %v5927_v39 = vld [vmem:[#allocation6 + $0x468] ss:$28 sps:$4 sm:$0xff]  }
  0xad   : > { %v5925_v37 = vld [vmem:[#allocation6 + $0x46c] ss:$28 sps:$4 sm:$0xff]   ;;  %v5867_v40 = vld [vmem:[#allocation6 + $0x2d8] ss:$28 sps:$4 sm:$0xff]   ;;  %v5931_v41 = vld [vmem:[#allocation6 + $0x4a4] ss:$28 sps:$4 sm:$0xff]  }
  0xae   : > { %2888 = vmatpush1.bf16.msra.mxu0 %v5837_v7  ;;  %3149 = vmatpush1.bf16.msra.mxu1 %v5909_v27  ;;  %v5868_v42 = vld [vmem:[#allocation6 + $0x314] ss:$28 sps:$4 sm:$0xff]   ;;  %v5933_v44 = vld [vmem:[#allocation6 + $0x4a0] ss:$28 sps:$4 sm:$0xff]   ;;  %v5871_v45 = vld [vmem:[#allocation6 + $0x34c] ss:$28 sps:$4 sm:$0xff]  }
  0xaf   : > { %2889 = vmatprep.subr.bf16.mxu0 %v5838_v8  ;;  %3150 = vmatprep.subr.bf16.mxu1 %v5913_v30  ;;  %v5870_v43 = vld [vmem:[#allocation6 + $0x310] ss:$28 sps:$4 sm:$0xff]   ;;  %v5937_v46 = vld [vmem:[#allocation6 + $0x4dc] ss:$28 sps:$4 sm:$0xff]   ;;  %v5873_v49 = vld [vmem:[#allocation6 + $0x348] ss:$28 sps:$4 sm:$0xff]  }
  0xb0   : > { %v332_v47 = vld [vmem:[%s7041_s13 + $0x18] sm:$0xff]  ;;  %v339_v48 = vld [vmem:[%s7041_s13 + $0x50] sm:$0xff]  ;;  %v329_v50 = vld [vmem:[%s7041_s13] sm:$0xff]  ;;  %s3741_s28 = sld [smem:[#allocation2]]  ;;  %s4922_s30 = sshll.u32 %s7037_s9, 6 }
  0xb1   : > { %v5876_v51 = vld [vmem:[#allocation6 + $0x384] ss:$28 sps:$4 sm:$0xff]   ;;  %v336_v52 = vld [vmem:[%s7041_s13 + $0x38] sm:$0xff]  ;;  %v7064_v54 = vpack.c.bf16 %v339_v48, %v332_v47  ;;  %v5943_v56 = vld [vmem:[#allocation6 + $0x514] ss:$28 sps:$4 sm:$0xff]   ;;  %s325_s10 = scalar_lea.vmem [#allocation12], %s4922_s30 }
  0xb2   : > { %2890 = vmatpush1.bf16.msra.mxu0 %v5840_v9  ;;  %3151 = vmatpush1.bf16.msra.mxu1 %v5915_v31  ;;  %v5939_v53 = vld [vmem:[#allocation6 + $0x4d8] ss:$28 sps:$4 sm:$0xff]   ;;  %v7069_v58 = vpack.c.bf16 %v336_v52, %v329_v50  ;;  %v5945_v59 = vld [vmem:[#allocation6 + $0x510] ss:$28 sps:$4 sm:$0xff]   ;;  %v5874_v60 = vld [vmem:[#allocation6 + $0x380] ss:$28 sps:$4 sm:$0xff]  }
  0xb3   : > { %2891 = vmatprep.subr.bf16.mxu0 %v5841_v10  ;;  %3152 = vmatprep.subr.bf16.mxu1 %v5919_v33  ;;  %v344_v55 = vld [vmem:[%s7041_s13 + $0x78] sm:$0xff]  ;;  %v351_v57 = vld [vmem:[%s7041_s13 + $0xb0] sm:$0xff]  ;;  %v5949_v63 = vld [vmem:[#allocation6 + $0x54c] ss:$28 sps:$4 sm:$0xff]   ;;  %s4796_s15 = sshll.u32 %s325_s10, 4  ;;  %s5484_s18 = sshll.u32 %s6843_s0, 10  ;;  %s7541_s15 = int_to_ptr.vmem [resolvable:$true] %s4796_s15 }
  0xb4   : > { %3178 = vmatprep.mubr.bf16.mxu1 %v7064_v54  ;;  %v5879_v61 = vld [vmem:[#allocation6 + $0x3bc] ss:$28 sps:$4 sm:$0xff]   ;;  %v7071_v62 = vpack.c.bf16 %v351_v57, %v344_v55  ;;  %v343_v1 = vld [vmem:[%s7041_s13 + $0x70] sm:$0xff]  ;;  %v5951_v2 = vld [vmem:[#allocation6 + $0x548] ss:$28 sps:$4 sm:$0xff]   ;;  %s7546_s27 = scalar_lea.hbm %s7596_s6, %s5484_s18  ;;  %s4782_s0 = scalar_lea.sflag [#allocation5], %s7037_s9 }
  0xb5   : > { %v5877_v0 = vld [vmem:[#allocation6 + $0x3b8] ss:$28 sps:$4 sm:$0xff]   ;;  %v350_v3 = vld [vmem:[%s7041_s13 + $0xa8] sm:$0xff]  ;;  %v5955_v4 = vld [vmem:[#allocation6 + $0x584] ss:$28 sps:$4 sm:$0xff]   ;;  %s6693_s14 = scalar_lea.vmem %s7541_s15, 1024 }
  0xb6   : > { %2892 = vmatpush1.bf16.msra.mxu0 %v5843_v11  ;;  %3153 = vmatpush1.bf16.msra.mxu1 %v5921_v35  ;;  %v5882_v5 = vld [vmem:[#allocation6 + $0x3f4] ss:$28 sps:$4 sm:$0xff]   ;;  %v7077_v6 = vpack.c.bf16 %v350_v3, %v343_v1  ;;  %v5957_v7 = vld [vmem:[#allocation6 + $0x580] ss:$28 sps:$4 sm:$0xff]   ;;  %v5885_v9 = vld [vmem:[#allocation6 + $0x42c] ss:$28 sps:$4 sm:$0xff]   ;;  %p6694_p4 = scmp.ne.s32.totalorder %s7541_s15, %s6693_s14 }
  0xb7   : > { %2893 = vmatprep.subr.bf16.mxu0 %v5844_v12  ;;  %3154 = vmatprep.subr.bf16.mxu1 %v5925_v37  ;;  %v5880_v8 = vld [vmem:[#allocation6 + $0x3f0] ss:$28 sps:$4 sm:$0xff]   ;;  %v5961_v10 = vld [vmem:[#allocation6 + $0x5bc] ss:$28 sps:$4 sm:$0xff]   ;;  %v5883_v12 = vld [vmem:[#allocation6 + $0x428] ss:$28 sps:$4 sm:$0xff]  }
  0xb8   : > { %v5963_v11 = vld [vmem:[#allocation6 + $0x5b8] ss:$28 sps:$4 sm:$0xff]   ;;  %v5888_v14 = vld [vmem:[#allocation6 + $0x464] ss:$28 sps:$4 sm:$0xff]   ;;  %v5897_v27 = vld [vmem:[#allocation6 + $0x50c] ss:$28 sps:$4 sm:$0xff]   ;;  %p6695_p5 = pnand %p6694_p4, %p6988_p8 }
  0xb9   : > { %v5967_v13 = vld [vmem:[#allocation6 + $0x5f4] ss:$28 sps:$4 sm:$0xff]   ;;  %v5981_v24 = vld [vmem:[#allocation6 + $0x660] ss:$28 sps:$4 sm:$0xff]   ;;  %v5999_v35 = vld [vmem:[#allocation6 + $0x70c] ss:$28 sps:$4 sm:$0xff]  }
  0xba   : > { %2894 = vmatpush1.bf16.msra.mxu0 %v5846_v16  ;;  %3155 = vmatpush1.bf16.msra.mxu1 %v5927_v39  ;;  %v5969_v16 = vld [vmem:[#allocation6 + $0x5f0] ss:$28 sps:$4 sm:$0xff]   ;;  %v5985_v26 = vld [vmem:[#allocation6 + $0x69c] ss:$28 sps:$4 sm:$0xff]   ;;  %v5900_v31 = vld [vmem:[#allocation6 + $0x544] ss:$28 sps:$4 sm:$0xff]   ;;  %p6696_p7 = pneg %p6695_p5 }
  0xbb   : > { %2895 = vmatprep.subr.bf16.mxu0 %v5847_v17  ;;  %3156 = vmatprep.subr.bf16.mxu1 %v5931_v41  ;;  %v5886_v17 = vld [vmem:[#allocation6 + $0x460] ss:$28 sps:$4 sm:$0xff]   ;;  %v5894_v23 = vld [vmem:[#allocation6 + $0x4d4] ss:$28 sps:$4 sm:$0xff]   ;;  %v338_v37 = vld [vmem:[%s7041_s13 + $0x48] sm:$0xff]  ;;  %s6781_s16 = smov [#allocation12]  }
  0xbc   : > { %v5991_v30 = vld [vmem:[#allocation6 + $0x6d4] ss:$28 sps:$4 sm:$0xff]   ;;  %v5906_v33 = vld [vmem:[#allocation6 + $0x57c] ss:$28 sps:$4 sm:$0xff]   ;;  %v353_v39 = vld [vmem:[%s7041_s13 + $0xc0] sm:$0xff]  ;;  %s6697_s8 = sshll.u32 %s6781_s16, 4  ;;  %s6698_s8 = int_to_ptr.vmem [resolvable:$false] %s6697_s8 }
  0xbd   : > { %v5904_v41 = vld [vmem:[#allocation6 + $0x578] ss:$28 sps:$4 sm:$0xff]   ;;  %v5918_v47 = vld [vmem:[#allocation6 + $0x5ec] ss:$28 sps:$4 sm:$0xff]   ;;  %v6003_v48 = vld [vmem:[#allocation6 + $0x740] ss:$28 sps:$4 sm:$0xff]   ;;  %p6700_p12 = scmp.lt.s32.totalorder %s7541_s15, %s6698_s8 }
  0xbe   : > { %2896 = vmatpush1.bf16.msra.mxu0 %v5849_v18  ;;  %3157 = vmatpush1.bf16.msra.mxu1 %v5933_v44  ;;  %v5973_v18 = vld [vmem:[#allocation6 + $0x62c] ss:$28 sps:$4 sm:$0xff]   ;;  %v5912_v44 = vld [vmem:[#allocation6 + $0x5b4] ss:$28 sps:$4 sm:$0xff]   ;;  %v345_v50 = vld [vmem:[%s7041_s13 + $0x80] sm:$0xff]  ;;  %s6699_s11 = scalar_lea.vmem %s6698_s8, 2048 }
  0xbf   : > { %2897 = vmatprep.subr.bf16.mxu0 %v5850_v19  ;;  %3158 = vmatprep.subr.bf16.mxu1 %v5937_v46  ;;  %v5891_v19 = vld [vmem:[#allocation6 + $0x49c] ss:$28 sps:$4 sm:$0xff]   ;;  %v5910_v46 = vld [vmem:[#allocation6 + $0x5b0] ss:$28 sps:$4 sm:$0xff]   ;;  %v6021_v3 = vld [vmem:[#allocation6 + $0x7e8] ss:$28 sps:$4 sm:$0xff]   ;;  %p6701_p2 = scmp.lt.s32.totalorder %s6699_s11, %s6693_s14 }
  0xc0   : > { %v334_v52 = vld [vmem:[%s7041_s13 + $0x28] sm:$0xff]  ;;  %v6009_v55 = vld [vmem:[#allocation6 + $0x778] ss:$28 sps:$4 sm:$0xff]  }
  0xc1   : > { %v6017_v57 = vld [vmem:[#allocation6 + $0x7b4] ss:$28 sps:$4 sm:$0xff]   ;;  %v6023_v1 = vld [vmem:[#allocation6 + $0x7ec] ss:$28 sps:$4 sm:$0xff]   ;;  %p6702_p1 = por %p6701_p2, %p6700_p12 }
  0xc2   : > { %2898 = vmatpush1.bf16.msra.mxu0 %v5852_v20  ;;  %3159 = vmatpush1.bf16.msra.mxu1 %v5939_v53  ;;  %v5975_v20 = vld [vmem:[#allocation6 + $0x628] ss:$28 sps:$4 sm:$0xff]  }
  0xc3   : > { %2899 = vmatprep.subr.bf16.mxu0 %v5853_v21  ;;  %3160 = vmatprep.subr.bf16.mxu1 %v5943_v56  ;;  %v5889_v21 = vld [vmem:[#allocation6 + $0x498] ss:$28 sps:$4 sm:$0xff]   ;;  %v341_v53 = vld [vmem:[%s7041_s13 + $0x60] sm:$0xff]  ;;  %p6703_p13 = pnand %p6702_p1, %p6696_p7 }
  0xc4   : > { %v5916_v56 = vld [vmem:[#allocation6 + $0x5e8] ss:$28 sps:$4 sm:$0xff]  }
  0xc6   : > { %2900 = vmatpush1.bf16.msra.mxu0 %v5855_v22  ;;  %3161 = vmatpush1.bf16.msra.mxu1 %v5945_v59  ;;  %v5979_v22 = vld [vmem:[#allocation6 + $0x664] ss:$28 sps:$4 sm:$0xff]  }
  0xc7   : > { %2901 = vmatprep.subr.bf16.mxu0 %v5856_v25  ;;  %3162 = vmatprep.subr.bf16.mxu1 %v5949_v63  ;;  %v5892_v25 = vld [vmem:[#allocation6 + $0x4d0] ss:$28 sps:$4 sm:$0xff]  }
  0xc8   : > { %v6015_v63 = vld [vmem:[#allocation6 + $0x7b0] ss:$28 sps:$4 sm:$0xff]  }
  0xca   : > { %2902 = vmatpush1.bf16.msra.mxu0 %v5858_v28  ;;  %3163 = vmatpush1.bf16.msra.mxu1 %v5951_v2  ;;  %v5987_v28 = vld [vmem:[#allocation6 + $0x698] ss:$28 sps:$4 sm:$0xff]  }
  0xcb   : > { %2903 = vmatprep.subr.bf16.mxu0 %v5859_v29  ;;  %3164 = vmatprep.subr.bf16.mxu1 %v5955_v4  ;;  %v5895_v29 = vld [vmem:[#allocation6 + $0x508] ss:$28 sps:$4 sm:$0xff]   ;;  %v5930_v2 = vld [vmem:[#allocation6 + $0x65c] ss:$28 sps:$4 sm:$0xff]  }
  0xcc   : > { %v5928_v4 = vld [vmem:[#allocation6 + $0x658] ss:$28 sps:$4 sm:$0xff]  }
  0xce   : > { %2904 = vmatpush1.bf16.msra.mxu0 %v5861_v32  ;;  %3165 = vmatpush1.bf16.msra.mxu1 %v5957_v7  ;;  %v5898_v32 = vld [vmem:[#allocation6 + $0x540] ss:$28 sps:$4 sm:$0xff]   ;;  %v5936_v7 = vld [vmem:[#allocation6 + $0x694] ss:$28 sps:$4 sm:$0xff]  }
  0xcf   : > { %2905 = vmatprep.subr.bf16.mxu0 %v5862_v34  ;;  %3166 = vmatprep.subr.bf16.mxu1 %v5961_v10  ;;  %v5993_v34 = vld [vmem:[#allocation6 + $0x6d0] ss:$28 sps:$4 sm:$0xff]   ;;  %v6035_v10 = vld [vmem:[#allocation6 + $0x85c] ss:$28 sps:$4 sm:$0xff]  }
  0xd2   : > { %2906 = vmatpush1.bf16.msra.mxu0 %v5864_v36  ;;  %3167 = vmatpush1.bf16.msra.mxu1 %v5963_v11  ;;  %v331_v36 = vld [vmem:[%s7041_s13 + $0x10] sm:$0xff]  ;;  %v5942_v11 = vld [vmem:[#allocation6 + $0x6cc] ss:$28 sps:$4 sm:$0xff]  }
  0xd3   : > { %2907 = vmatprep.subr.bf16.mxu0 %v5865_v38  ;;  %3168 = vmatprep.subr.bf16.mxu1 %v5967_v13  ;;  %v346_v38 = vld [vmem:[%s7041_s13 + $0x88] sm:$0xff]  ;;  %v6033_v13 = vld [vmem:[#allocation6 + $0x858] ss:$28 sps:$4 sm:$0xff]  }
  0xd6   : > { %2908 = vmatpush1.bf16.msra.mxu0 %v5867_v40  ;;  %3169 = vmatpush1.bf16.msra.mxu1 %v5969_v16  ;;  %v5997_v40 = vld [vmem:[#allocation6 + $0x708] ss:$28 sps:$4 sm:$0xff]  }
  0xd7   : > { %2909 = vmatprep.subr.bf16.mxu0 %v5868_v42  ;;  %3170 = vmatprep.subr.bf16.mxu1 %v5973_v18  ;;  %v7085_v42 = vpack.c.bf16 %v338_v37, %v331_v36  ;;  %v5948_v16 = vld [vmem:[#allocation6 + $0x704] ss:$28 sps:$4 sm:$0xff]   ;;  %v5978_v36 = vld [vmem:[#allocation6 + $0x81c] ss:$28 sps:$4 sm:$0xff]  }
  0xd8   : > { %v5946_v18 = vld [vmem:[#allocation6 + $0x700] ss:$28 sps:$4 sm:$0xff]   ;;  %v5976_v37 = vld [vmem:[#allocation6 + $0x818] ss:$28 sps:$4 sm:$0xff]  }
  0xda   : > { %2910 = vmatpush1.bf16.msra.mxu0 %v5870_v43  ;;  %3171 = vmatpush1.bf16.msra.mxu1 %v5975_v20  ;;  %v6005_v43 = vld [vmem:[#allocation6 + $0x744] ss:$28 sps:$4 sm:$0xff]   ;;  %v6047_v20 = vld [vmem:[#allocation6 + $0x8cc] ss:$28 sps:$4 sm:$0xff]  }
  0xdb   : > { %2911 = vmatprep.subr.bf16.mxu0 %v5871_v45  ;;  %3172 = vmatprep.subr.bf16.mxu1 %v5979_v22  ;;  %v7087_v45 = vpack.c.bf16 %v353_v39, %v346_v38  ;;  %v6045_v22 = vld [vmem:[#allocation6 + $0x8c8] ss:$28 sps:$4 sm:$0xff]  }
  0xdc   : > { %v6069_v38 = vld [vmem:[#allocation6 + $0x9a8] ss:$28 sps:$4 sm:$0xff]  }
  0xdd   : > { %v6077_v39 = vld [vmem:[#allocation6 + $0x9e4] ss:$28 sps:$4 sm:$0xff]  }
  0xde   : > { %2912 = vmatpush1.bf16.msra.mxu0 %v5873_v49  ;;  %3173 = vmatpush1.bf16.msra.mxu1 %v5981_v24  ;;  %v6011_v49 = vld [vmem:[#allocation6 + $0x77c] ss:$28 sps:$4 sm:$0xff]   ;;  %v5960_v24 = vld [vmem:[#allocation6 + $0x774] ss:$28 sps:$4 sm:$0xff]  }
  0xdf   : > { %2934 = vmatprep.subr.bf16.mxu0 %v5876_v51  ;;  %3174 = vmatprep.subr.bf16.mxu1 %v5985_v26  ;;  %v352_v51 = vld [vmem:[%s7041_s13 + $0xb8] sm:$0xff] }
  0xe0   : > { %v7095_v59 = vpack.c.bf16 %v352_v51, %v345_v50  ;;  %v6051_v26 = vld [vmem:[#allocation6 + $0x900] ss:$28 sps:$4 sm:$0xff]  }
  0xe1   : > { %2914 = vmatmul.mubr.bf16.vlgmr.msra.gmra.mrb[0].mxu0 %v7069_v58  ;;  %v5996_v50 = vld [vmem:[#allocation6 + $0x8c4] ss:$28 sps:$4 sm:$0xff]  }
  0xe2   : > { %2935 = vmatpush1.bf16.msra.mxu0 %v5874_v60  ;;  %2923 = vmatprep.mubr.bf16.mxu0 %v7071_v62  ;;  %v5924_v60 = vld [vmem:[#allocation6 + $0x624] ss:$28 sps:$4 sm:$0xff]  }
  0xe3   : > { %2936 = vmatprep.subr.bf16.mxu0 %v5879_v61  ;;  %3175 = vmatpush1.bf16.msra.mxu1 %v5987_v28  ;;  %v7097_v61 = vpack.c.bf16 %v341_v53, %v334_v52  ;;  %v6059_v28 = vld [vmem:[#allocation6 + $0x93c] ss:$28 sps:$4 sm:$0xff]   ;;  %v333_v53 = vld [vmem:[%s7041_s13 + $0x20] sm:$0xff] }
  0xe4   : > { %3176 = vmatprep.subr.bf16.mxu1 %v5991_v30  ;;  %v6057_v30 = vld [vmem:[#allocation6 + $0x938] ss:$28 sps:$4 sm:$0xff]   ;;  %v5994_v51 = vld [vmem:[#allocation6 + $0x8c0] ss:$28 sps:$4 sm:$0xff]  }
  0xe5   : > { %v6002_v52 = vld [vmem:[#allocation6 + $0x8fc] ss:$28 sps:$4 sm:$0xff]  }
  0xe6   : > { %2937 = vmatpush1.bf16.msra.mxu0 %v5877_v0  ;;  %v5922_v0 = vld [vmem:[#allocation6 + $0x620] ss:$28 sps:$4 sm:$0xff]  }
  0xe7   : > { %2938 = vmatprep.subr.bf16.mxu0 %v5882_v5  ;;  %3177 = vmatpush1.bf16.msra.mxu1 %v5993_v34  ;;  %v6029_v5 = vld [vmem:[#allocation6 + $0x824] ss:$28 sps:$4 sm:$0xff]   ;;  %v6063_v34 = vld [vmem:[#allocation6 + $0x970] ss:$28 sps:$4 sm:$0xff]  }
  0xe8   : > { %3199 = vmatprep.subr.bf16.mxu1 %v5999_v35  ;;  %v6071_v35 = vld [vmem:[#allocation6 + $0x9ac] ss:$28 sps:$4 sm:$0xff]  }
  0xe9   : > { %2924 = vmatmul.mubr.bf16.gmra.mrb[4].mxu0 %v7077_v6 }
  0xea   : > { %2939 = vmatpush1.bf16.msra.mxu0 %v5880_v8  ;;  %2966 = vmatprep.mubr.bf16.mxu0 %v7064_v54  ;;  %v6027_v8 = vld [vmem:[#allocation6 + $0x820] ss:$28 sps:$4 sm:$0xff]  }
  0xeb   : > { %2940 = vmatprep.subr.bf16.mxu0 %v5885_v9  ;;  %3179 = vmatmul.mubr.bf16.vlgmr.msra.gmra.mrb[0].mxu1 %v7085_v42  ;;  %v5934_v9 = vld [vmem:[#allocation6 + $0x690] ss:$28 sps:$4 sm:$0xff]  }
  0xec   : > { %3200 = vmatpush1.bf16.msra.mxu1 %v5997_v40  ;;  %3188 = vmatprep.mubr.bf16.mxu1 %v7087_v45  ;;  %v5984_v40 = vld [vmem:[#allocation6 + $0x854] ss:$28 sps:$4 sm:$0xff]  }
  0xed   : > { %3201 = vmatprep.subr.bf16.mxu1 %v6005_v43  ;;  %v6075_v43 = vld [vmem:[#allocation6 + $0x9e0] ss:$28 sps:$4 sm:$0xff]  }
  0xee   : > { %2941 = vmatpush1.bf16.msra.mxu0 %v5883_v12  ;;  %v5940_v12 = vld [vmem:[#allocation6 + $0x6c8] ss:$28 sps:$4 sm:$0xff]  }
  0xef   : > { %2942 = vmatprep.subr.bf16.mxu0 %v5888_v14  ;;  %v6041_v14 = vld [vmem:[#allocation6 + $0x894] ss:$28 sps:$4 sm:$0xff]  }
  0xf0   : > { %3202 = vmatpush1.bf16.msra.mxu1 %v6003_v48  ;;  %v6081_v48 = vld [vmem:[#allocation6 + $0xa18] ss:$28 sps:$4 sm:$0xff]  }
  0xf1   : > { %3203 = vmatprep.subr.bf16.mxu1 %v6011_v49  ;;  %v6088_v49 = vld [vmem:[#allocation6 + $0xa54] ss:$28 sps:$4 sm:$0xff]  }
  0xf2   : > { %2943 = vmatpush1.bf16.msra.mxu0 %v5886_v17  ;;  %v6039_v17 = vld [vmem:[#allocation6 + $0x890] ss:$28 sps:$4 sm:$0xff]  }
  0xf3   : > { %2944 = vmatprep.subr.bf16.mxu0 %v5891_v19  ;;  %3189 = vmatmul.mubr.bf16.gmra.mrb[4].mxu1 %v7095_v59  ;;  %v5954_v19 = vld [vmem:[#allocation6 + $0x73c] ss:$28 sps:$4 sm:$0xff]  }
  0xf4   : > { %3204 = vmatpush1.bf16.msra.mxu1 %v6009_v55  ;;  %3231 = vmatprep.mubr.bf16.mxu1 %v7097_v61  ;;  %v6086_v55 = vld [vmem:[#allocation6 + $0xa50] ss:$28 sps:$4 sm:$0xff]  }
  0xf5   : > { %3205 = vmatprep.subr.bf16.mxu1 %v6017_v57  ;;  %v340_v57 = vld [vmem:[%s7041_s13 + $0x58] sm:$0xff] }
  0xf6   : > { %2945 = vmatpush1.bf16.msra.mxu0 %v5889_v21  ;;  %v5952_v21 = vld [vmem:[#allocation6 + $0x738] ss:$28 sps:$4 sm:$0xff]  }
  0xf7   : > { %2946 = vmatprep.subr.bf16.mxu0 %v5894_v23  ;;  %v6053_v23 = vld [vmem:[#allocation6 + $0x904] ss:$28 sps:$4 sm:$0xff]  }
  0xf8   : > { %3206 = vmatpush1.bf16.msra.mxu1 %v6015_v63  ;;  %v355_v63 = vld [vmem:[%s7041_s13 + $0xd0] sm:$0xff] }
  0xf9   : > { %3207 = vmatprep.subr.bf16.mxu1 %v6023_v1  ;;  %v6000_v1 = vld [vmem:[#allocation6 + $0x8f8] ss:$28 sps:$4 sm:$0xff]  }
  0xfa   : > { %2947 = vmatpush1.bf16.msra.mxu0 %v5892_v25  ;;  %v5958_v25 = vld [vmem:[#allocation6 + $0x770] ss:$28 sps:$4 sm:$0xff]  }
  0xfb   : > { %2948 = vmatprep.subr.bf16.mxu0 %v5897_v27  ;;  %v5966_v27 = vld [vmem:[#allocation6 + $0x7ac] ss:$28 sps:$4 sm:$0xff]  }
  0xfc   : > { %3208 = vmatpush1.bf16.msra.mxu1 %v6021_v3  ;;  %v6100_v3 = vld [vmem:[#allocation6 + $0xac4] ss:$28 sps:$4 sm:$0xff]  }
  0xfd   : > { %3209 = vmatprep.subr.bf16.mxu1 %v6029_v5 }
  0xfe   : > { %2949 = vmatpush1.bf16.msra.mxu0 %v5895_v29  ;;  %v5964_v29 = vld [vmem:[#allocation6 + $0x7a8] ss:$28 sps:$4 sm:$0xff]  }
  0xff   : > { %2950 = vmatprep.subr.bf16.mxu0 %v5900_v31  ;;  %v6065_v31 = vld [vmem:[#allocation6 + $0x974] ss:$28 sps:$4 sm:$0xff]  }
 0x100   : > { %3210 = vmatpush1.bf16.msra.mxu1 %v6027_v8  ;;  %v6014_v8 = vld [vmem:[#allocation6 + $0x96c] ss:$28 sps:$4 sm:$0xff]  }
 0x101   : > { %3211 = vmatprep.subr.bf16.mxu1 %v6035_v10  ;;  %v6098_v10 = vld [vmem:[#allocation6 + $0xac0] ss:$28 sps:$4 sm:$0xff]  }
 0x102   : > { %2951 = vmatpush1.bf16.msra.mxu0 %v5898_v32  ;;  %v5972_v32 = vld [vmem:[#allocation6 + $0x7e4] ss:$28 sps:$4 sm:$0xff]  }
 0x103   : > { %2952 = vmatprep.subr.bf16.mxu0 %v5906_v33  ;;  %v5970_v33 = vld [vmem:[#allocation6 + $0x7e0] ss:$28 sps:$4 sm:$0xff]  }
 0x104   : > { %3212 = vmatpush1.bf16.msra.mxu1 %v6033_v13  ;;  %v6012_v13 = vld [vmem:[#allocation6 + $0x968] ss:$28 sps:$4 sm:$0xff]  }
 0x105   : > { %3213 = vmatprep.subr.bf16.mxu1 %v6041_v14  ;;  %v6104_v14 = vld [vmem:[#allocation6 + $0xaf8] ss:$28 sps:$4 sm:$0xff]  }
 0x106   : > { %2953 = vmatpush1.bf16.msra.mxu0 %v5904_v41  ;;  %v5982_v41 = vld [vmem:[#allocation6 + $0x850] ss:$28 sps:$4 sm:$0xff]  }
 0x107   : > { %2954 = vmatprep.subr.bf16.mxu0 %v5912_v44  ;;  %v6083_v44 = vld [vmem:[#allocation6 + $0xa1c] ss:$28 sps:$4 sm:$0xff]  }
 0x108   : > { %3214 = vmatpush1.bf16.msra.mxu1 %v6039_v17  ;;  %v6112_v17 = vld [vmem:[#allocation6 + $0xb34] ss:$28 sps:$4 sm:$0xff]  }
 0x109   : > { %3215 = vmatprep.subr.bf16.mxu1 %v6047_v20  ;;  %v6110_v20 = vld [vmem:[#allocation6 + $0xb30] ss:$28 sps:$4 sm:$0xff]  }
 0x10a   : > { %2955 = vmatpush1.bf16.msra.mxu0 %v5910_v46  ;;  %v5990_v46 = vld [vmem:[#allocation6 + $0x88c] ss:$28 sps:$4 sm:$0xff]  }
 0x10b   : > { %2956 = vmatprep.subr.bf16.mxu0 %v5918_v47  ;;  %v5988_v47 = vld [vmem:[#allocation6 + $0x888] ss:$28 sps:$4 sm:$0xff]  }
 0x10c   : > { %3216 = vmatpush1.bf16.msra.mxu1 %v6045_v22  ;;  %v6118_v22 = vld [vmem:[#allocation6 + $0xb6c] ss:$28 sps:$4 sm:$0xff]  }
 0x10d   : > { %3217 = vmatprep.subr.bf16.mxu1 %v6053_v23  ;;  %v6026_v23 = vld [vmem:[#allocation6 + $0x9dc] ss:$28 sps:$4 sm:$0xff]  }
 0x10e   : > { %2957 = vmatpush1.bf16.msra.mxu0 %v5916_v56  ;;  %v6094_v56 = vld [vmem:[#allocation6 + $0xa8c] ss:$28 sps:$4 sm:$0xff]  }
 0x10f   : > { %2958 = vmatprep.subr.bf16.mxu0 %v5924_v60  ;;  %v348_v60 = vld [vmem:[%s7041_s13 + $0x98] sm:$0xff] }
 0x110   : > { %3218 = vmatpush1.bf16.msra.mxu1 %v6051_v26  ;;  %v7111_v5 = vpack.c.bf16 %v355_v63, %v348_v60  ;;  %v6124_v26 = vld [vmem:[#allocation6 + $0xba4] ss:$28 sps:$4 sm:$0xff]   ;;  %v356_v60 = vld [vmem:[%s7041_s13 + $0xd8] sm:$0xff] }
 0x111   : > { %3219 = vmatprep.subr.bf16.mxu1 %v6059_v28  ;;  %v812_v28 = vld [vmem:[#allocation6 + $0xc10] sm:$0x11]  ;;  %v6149_v63 = vld [vmem:[#allocation6 + $0x248] ss:$28 sps:$4 sm:$0xff]  }
 0x112   : > { %2959 = vmatpush1.bf16.msra.mxu0 %v5922_v0  ;;  %v6092_v0 = vld [vmem:[#allocation6 + $0xa88] ss:$28 sps:$4 sm:$0xff]  }
 0x113   : > { %2960 = vmatprep.subr.bf16.mxu0 %v5930_v2  ;;  %v7109_v2 = vpack.c.bf16 %v340_v57, %v333_v53  ;;  %v6054_v53 = vld [vmem:[#allocation6 + $0xaf0] ss:$28 sps:$4 sm:$0xff]   ;;  %v349_v57 = vld [vmem:[%s7041_s13 + $0xa0] sm:$0xff] }
 0x114   : > { %3220 = vmatpush1.bf16.msra.mxu1 %v6057_v30  ;;  %v6030_v30 = vld [vmem:[#allocation6 + $0xa10] ss:$28 sps:$4 sm:$0xff]  }
 0x115   : > { %3221 = vmatprep.subr.bf16.mxu1 %v6065_v31  ;;  %v6130_v31 = vld [vmem:[#allocation6 + $0xbdc] ss:$28 sps:$4 sm:$0xff]  }
 0x116   : > { %2961 = vmatpush1.bf16.msra.mxu0 %v5928_v4  ;;  %v6008_v4 = vld [vmem:[#allocation6 + $0x934] ss:$28 sps:$4 sm:$0xff]  }
 0x117   : > { %2962 = vmatprep.subr.bf16.mxu0 %v5936_v7  ;;  %v6006_v7 = vld [vmem:[#allocation6 + $0x930] ss:$28 sps:$4 sm:$0xff]  }
 0x118   : > { %3222 = vmatpush1.bf16.msra.mxu1 %v6063_v34 }
 0x119   : > { %3223 = vmatprep.subr.bf16.mxu1 %v6071_v35  ;;  %v6128_v35 = vld [vmem:[#allocation6 + $0xbd8] ss:$28 sps:$4 sm:$0xff]  }
 0x11a   : > { %2963 = vmatpush1.bf16.msra.mxu0 %v5934_v9  ;;  %v347_v9 = vld [vmem:[%s7041_s13 + $0x90] sm:$0xff] }
 0x11b   : > { %2964 = vmatprep.subr.bf16.mxu0 %v5942_v11  ;;  %v6106_v11 = vld [vmem:[#allocation6 + $0xafc] ss:$28 sps:$4 sm:$0xff]  }
 0x11c   : > { %3224 = vmatpush1.bf16.msra.mxu1 %v6069_v38 }
 0x11d   : > { %3225 = vmatprep.subr.bf16.mxu1 %v6077_v39  ;;  %v6044_v39 = vld [vmem:[#allocation6 + $0xa84] ss:$28 sps:$4 sm:$0xff]  }
 0x11e   : > { %2965 = vmatpush1.bf16.msra.mxu0 %v5940_v12  ;;  %v354_v12 = vld [vmem:[%s7041_s13 + $0xc8] sm:$0xff] }
 0x11f   : > { %2987 = vmatprep.subr.bf16.mxu0 %v5948_v16  ;;  %v7117_v16 = vpack.c.bf16 %v354_v12, %v347_v9  ;;  %v6155_v9 = vld [vmem:[#allocation6 + $0xc0] ss:$28 sps:$4 sm:$0xff]   ;;  %v811_v12 = vld [vmem:[#allocation6 + $0xc08] sm:$0x11] }
 0x120   : > { %3226 = vmatpush1.bf16.msra.mxu1 %v6075_v43  ;;  %v335_v43 = vld [vmem:[%s7041_s13 + $0x30] sm:$0xff] }
 0x121   : > { %2967 = vmatmul.mubr.bf16.vlgmr.msra.gmra.mrb[0].mxu0 %v7085_v42  ;;  %3227 = vmatprep.subr.bf16.mxu1 %v6083_v44 }
 0x122   : > { %2988 = vmatpush1.bf16.msra.mxu0 %v5946_v18  ;;  %2976 = vmatprep.mubr.bf16.mxu0 %v7087_v45  ;;  %v6020_v18 = vld [vmem:[#allocation6 + $0x9a4] ss:$28 sps:$4 sm:$0xff]  }
 0x123   : > { %2989 = vmatprep.subr.bf16.mxu0 %v5954_v19  ;;  %v6018_v19 = vld [vmem:[#allocation6 + $0x9a0] ss:$28 sps:$4 sm:$0xff]  }
 0x124   : > { %3228 = vmatpush1.bf16.msra.mxu1 %v6081_v48  ;;  %v6048_v48 = vld [vmem:[#allocation6 + $0xab8] ss:$28 sps:$4 sm:$0xff]  }
 0x125   : > { %3229 = vmatprep.subr.bf16.mxu1 %v6088_v49  ;;  %v6140_v49 = vld [vmem:[#allocation6 + $0x18] ss:$28 sps:$4 sm:$0xff]  }
 0x126   : > { %2990 = vmatpush1.bf16.msra.mxu0 %v5952_v21  ;;  %v6780_v21 = vmov 0  }
 0x127   : > { %2991 = vmatprep.subr.bf16.mxu0 %v5960_v24  ;;  %v6024_v24 = vld [vmem:[#allocation6 + $0x9d8] ss:$28 sps:$4 sm:$0xff]   ;;  %v7122_v34 = vsel %vm2857_vm0, 65535, %v6780_v21 }
 0x128   : > { %3230 = vmatpush1.bf16.msra.mxu1 %v6086_v55  ;;  %v6062_v55 = vld [vmem:[#allocation6 + $0xb2c] ss:$28 sps:$4 sm:$0xff]  }
 0x129   : > { %2977 = vmatmul.mubr.bf16.gmra.mrb[4].mxu0 %v7095_v59  ;;  %3252 = vmatprep.subr.bf16.mxu1 %v6094_v56  ;;  %v6145_v56 = vld [vmem:[#allocation6 + $0x50] ss:$28 sps:$4 sm:$0xff]  }
 0x12a   : > { %2992 = vmatpush1.bf16.msra.mxu0 %v5958_v25  ;;  %3019 = vmatprep.mubr.bf16.mxu0 %v7097_v61  ;;  %v6116_v25 = vld [vmem:[#allocation6 + $0xb68] ss:$28 sps:$4 sm:$0xff]  }
 0x12b   : > { %2993 = vmatprep.subr.bf16.mxu0 %v5966_v27  ;;  %3232 = vmatmul.mubr.bf16.vlgmr.msra.gmra.mrb[0].mxu1 %v7109_v2  ;;  %v6032_v27 = vld [vmem:[#allocation6 + $0xa14] ss:$28 sps:$4 sm:$0xff]  }
 0x12c   : > { %3253 = vmatpush1.bf16.msra.mxu1 %v6092_v0  ;;  %3241 = vmatprep.mubr.bf16.mxu1 %v7111_v5  ;;  %v6150_v0 = vld [vmem:[#allocation6 + $0x88] ss:$28 sps:$4 sm:$0xff]  }
 0x12d   : > { %3254 = vmatprep.subr.bf16.mxu1 %v6100_v3  ;;  %v7139_v3 = vpack.c.bf16 %v356_v60, %v349_v57  ;;  %v6127_v57 = vld [vmem:[#allocation6 + $0x15c] ss:$28 sps:$4 sm:$0xff]   ;;  %v6204_v60 = vld [vmem:[#allocation6 + $0x670] ss:$28 sps:$4 sm:$0xff]  }
 0x12e   : > { %2994 = vmatpush1.bf16.msra.mxu0 %v5964_v29  ;;  %v6122_v29 = vld [vmem:[#allocation6 + $0xba0] ss:$28 sps:$4 sm:$0xff]  }
 0x12f   : > { %2995 = vmatprep.subr.bf16.mxu0 %v5972_v32  ;;  %v5311_v32 = vcombine.high %v812_v28, %v812_v28 }
 0x130   : > { %3255 = vmatpush1.bf16.msra.mxu1 %v6098_v10  ;;  %v6159_v10 = vld [vmem:[#allocation6 + $0x2b8] ss:$28 sps:$4 sm:$0xff]  }
 0x131   : > { %3256 = vmatprep.subr.bf16.mxu1 %v6106_v11  ;;  %v2870_v38 = vand.u32 %v5311_v32, %v7122_v34  ;;  %v6074_v11 = vld [vmem:[#allocation6 + $0xb9c] ss:$28 sps:$4 sm:$0xff]   ;;  %v6097_v32 = vld [vmem:[#allocation6 + $0x44] ss:$28 sps:$4 sm:$0xff]  }
 0x132   : > { %2996 = vmatpush1.bf16.msra.mxu0 %v5970_v33  ;;  %v6038_v33 = vld [vmem:[#allocation6 + $0xa4c] ss:$28 sps:$4 sm:$0xff]  }
 0x133   : > { %2997 = vmatprep.subr.bf16.mxu0 %v5978_v36  ;;  %3242 = vmatmul.mubr.bf16.gmra.mrb[4].mxu1 %v7117_v16  ;;  %v5310_v36 = vcombine.low %v812_v28, %v812_v28  ;;  %v6174_v28 = vld [vmem:[#allocation6 + $0x360] ss:$28 sps:$4 sm:$0xff]  }
 0x134   : > { %3257 = vmatpush1.bf16.msra.mxu1 %v6104_v14  ;;  %3284 = vmatprep.mubr.bf16.mxu1 %v6780_v21  ;;  %v6160_v14 = vld [vmem:[#allocation6 + $0xf8] ss:$28 sps:$4 sm:$0xff]  }
 0x135   : > { %3258 = vmatprep.subr.bf16.mxu1 %v6112_v17  ;;  %v2867_v44 = vand.u32 %v5310_v36, %v7122_v34  ;;  %v6164_v17 = vld [vmem:[#allocation6 + $0x2f0] ss:$28 sps:$4 sm:$0xff]   ;;  %v6180_v36 = vld [vmem:[#allocation6 + $0x398] ss:$28 sps:$4 sm:$0xff]  }
 0x136   : > { %2998 = vmatpush1.bf16.msra.mxu0 %v5976_v37  ;;  %v6036_v37 = vld [vmem:[#allocation6 + $0xa48] ss:$28 sps:$4 sm:$0xff]  }
 0x137   : > { %2999 = vmatprep.subr.bf16.mxu0 %v5984_v40  ;;  %v6042_v40 = vld [vmem:[#allocation6 + $0xa80] ss:$28 sps:$4 sm:$0xff]  }
 0x138   : > { %3259 = vmatpush1.bf16.msra.mxu1 %v6110_v20  ;;  %v6078_v20 = vld [vmem:[#allocation6 + $0xbd0] ss:$28 sps:$4 sm:$0xff]  }
 0x139   : > { %3260 = vmatprep.subr.bf16.mxu1 %v6118_v22  ;;  %v6165_v22 = vld [vmem:[#allocation6 + $0x130] ss:$28 sps:$4 sm:$0xff]  }
 0x13a   : > { %3000 = vmatpush1.bf16.msra.mxu0 %v5982_v41  ;;  %v6050_v41 = vld [vmem:[#allocation6 + $0xabc] ss:$28 sps:$4 sm:$0xff]  }
 0x13b   : > { %3001 = vmatprep.subr.bf16.mxu0 %v5990_v46  ;;  %v342_v46 = vld [vmem:[%s7041_s13 + $0x68] sm:$0xff] }
 0x13c   : > { %3261 = vmatpush1.bf16.msra.mxu1 %v6116_v25 }
 0x13d   : > { %3262 = vmatprep.subr.bf16.mxu1 %v6124_v26  ;;  %v6170_v26 = vld [vmem:[#allocation6 + $0x168] ss:$28 sps:$4 sm:$0xff]  }
 0x13e   : > { %3002 = vmatpush1.bf16.msra.mxu0 %v5988_v47  ;;  %v6139_v47 = vld [vmem:[#allocation6 + $0x1d8] ss:$28 sps:$4 sm:$0xff]  }
 0x13f   : > { %3003 = vmatprep.subr.bf16.mxu0 %v5996_v50  ;;  %v7130_v50 = vpack.c.bf16 %v342_v46, %v335_v43  ;;  %v6189_v43 = vld [vmem:[#allocation6 + $0x5c8] ss:$28 sps:$4 sm:$0xff]  }
 0x140   : > { %3263 = vmatpush1.bf16.msra.mxu1 %v6122_v29  ;;  %v6091_v29 = vld [vmem:[#allocation6 + $0xc] ss:$28 sps:$4 sm:$0xff]  }
 0x141   : > { %3264 = vmatprep.subr.bf16.mxu1 %v6130_v31  ;;  %v6089_v31 = vld [vmem:[#allocation6 + $0x8] ss:$28 sps:$4 sm:$0xff]  }
 0x142   : > { %3004 = vmatpush1.bf16.msra.mxu0 %v5994_v51  ;;  %v6144_v51 = vld [vmem:[#allocation6 + $0x210] ss:$28 sps:$4 sm:$0xff]   ;;  %v6190_v46 = vld [vmem:[#allocation6 + $0x408] ss:$28 sps:$4 sm:$0xff]  }
 0x143   : > { %3005 = vmatprep.subr.bf16.mxu0 %v6002_v52  ;;  %v6056_v52 = vld [vmem:[#allocation6 + $0xaf4] ss:$28 sps:$4 sm:$0xff]  }
 0x144   : > { %3265 = vmatpush1.bf16.msra.mxu1 %v6128_v35  ;;  %v6095_v35 = vld [vmem:[#allocation6 + $0x40] ss:$28 sps:$4 sm:$0xff]  }
 0x145   : > { %3266 = vmatprep.subr.bf16.mxu1 %v2870_v38  ;;  %v6103_v38 = vld [vmem:[#allocation6 + $0x7c] ss:$28 sps:$4 sm:$0xff]  }
 0x146   : > { %3006 = vmatpush1.bf16.msra.mxu0 %v6000_v1  ;;  %v6060_v1 = vld [vmem:[#allocation6 + $0xb28] ss:$28 sps:$4 sm:$0xff]  }
 0x147   : > { %3007 = vmatprep.subr.bf16.mxu0 %v6008_v4  ;;  %v6154_v4 = vld [vmem:[#allocation6 + $0x280] ss:$28 sps:$4 sm:$0xff]  }
 0x148   : > { %3267 = vmatpush1.bf16.msra.mxu1 %v2867_v44  ;;  %v6107_v44 = vld [vmem:[#allocation6 + $0xb0] ss:$28 sps:$4 sm:$0xff]  }
 0x149   : > { %5485 = vmatprep.subr.bf16.mxu1 %v6139_v47  ;;  %v6115_v47 = vld [vmem:[#allocation6 + $0xec] ss:$28 sps:$4 sm:$0xff]  }
 0x14a   : > { %3008 = vmatpush1.bf16.msra.mxu0 %v6006_v7  ;;  %v6068_v7 = vld [vmem:[#allocation6 + $0xb64] ss:$28 sps:$4 sm:$0xff]  }
 0x14b   : > { %3009 = vmatprep.subr.bf16.mxu0 %v6014_v8  ;;  %5317 = vmatmul.mubr.msk.bf16.vlgmr.msra.gmra.mrb[0].mxu1 %vm2850_vm1, %v7130_v50  ;;  %v6066_v8 = vld [vmem:[#allocation6 + $0xb60] ss:$28 sps:$4 sm:$0xff]  }
 0x14c   : > { %5486 = vmatpush3.bf16.msra.mxu1 %v6140_v49  ;;  %3294 = vmatprep.mubr.bf16.mxu1 %v6780_v21  ;;  %v6113_v49 = vld [vmem:[#allocation6 + $0xe8] ss:$28 sps:$4 sm:$0xff]  }
 0x14d   : > { %5487 = vmatprep.subr.bf16.mxu1 %v6144_v51  ;;  %v6195_v51 = vld [vmem:[#allocation6 + $0x440] ss:$28 sps:$4 sm:$0xff]  }
 0x14e   : > { %3010 = vmatpush1.bf16.msra.mxu0 %v6012_v13  ;;  %v6072_v13 = vld [vmem:[#allocation6 + $0xb98] ss:$28 sps:$4 sm:$0xff]  }
 0x14f   : > { %3011 = vmatprep.subr.bf16.mxu0 %v6020_v18  ;;  %v6080_v18 = vld [vmem:[#allocation6 + $0xbd4] ss:$28 sps:$4 sm:$0xff]  }
 0x150   : > { %5488 = vmatpush3.bf16.msra.mxu1 %v6145_v56  ;;  %v6200_v56 = vld [vmem:[#allocation6 + $0x478] ss:$28 sps:$4 sm:$0xff]  }
 0x151   : > { %5489 = vmatprep.subr.bf16.mxu1 %v6149_v63  ;;  %v6125_v63 = vld [vmem:[#allocation6 + $0x158] ss:$28 sps:$4 sm:$0xff]  }
 0x152   : > { %3012 = vmatpush1.bf16.msra.mxu0 %v6018_v19  ;;  %v5309_v19 = vcombine.high %v811_v12, %v811_v12 }
 0x153   : > { %3013 = vmatprep.subr.bf16.mxu0 %v6026_v23  ;;  %5318 = vmatmul.mubr.msk.bf16.gmra.mrb[4].mxu1 %vm2850_vm1, %v7139_v3  ;;  %v5308_v23 = vcombine.low %v811_v12, %v811_v12  ;;  %v6136_v12 = vld [vmem:[#allocation6 + $0x1c8] ss:$28 sps:$4 sm:$0xff]  }
 0x154   : > { %5490 = vmatpush3.bf16.msra.mxu1 %v6150_v0  ;;  %3549 = vmatprep.mubr.bf16.mxu1 %v7057_v15  ;;  %v2864_v25 = vand.u32 %v5309_v19, %v7122_v34  ;;  %v6205_v0 = vld [vmem:[#allocation6 + $0x4b0] ss:$28 sps:$4 sm:$0xff]   ;;  %v6148_v19 = vld [vmem:[#allocation6 + $0x23c] ss:$28 sps:$4 sm:$0xff]  }
 0x155   : > { %5491 = vmatprep.subr.bf16.mxu1 %v6154_v4  ;;  %v6209_v4 = vld [vmem:[#allocation6 + $0x6a8] ss:$28 sps:$4 sm:$0xff]  }
 0x156   : > { %3014 = vmatpush1.bf16.msra.mxu0 %v6024_v24  ;;  %v6169_v24 = vld [vmem:[#allocation6 + $0x328] ss:$28 sps:$4 sm:$0xff]  }
 0x157   : > { %3015 = vmatprep.subr.bf16.mxu0 %v6032_v27  ;;  %v2861_v27 = vand.u32 %v5308_v23, %v7122_v34  ;;  %v6146_v23 = vld [vmem:[#allocation6 + $0x238] ss:$28 sps:$4 sm:$0xff]  }
 0x158   : > { %5492 = vmatpush3.bf16.msra.mxu1 %v6155_v9  ;;  %v6138_v9 = vld [vmem:[#allocation6 + $0x1cc] ss:$28 sps:$4 sm:$0xff]  }
 0x159   : > { %5493 = vmatprep.subr.bf16.mxu1 %v6159_v10  ;;  %v6214_v10 = vld [vmem:[#allocation6 + $0x6e0] ss:$28 sps:$4 sm:$0xff]  }
 0x15a   : > { %3016 = vmatpush1.bf16.msra.mxu0 %v6030_v30  ;;  %v6175_v30 = vld [vmem:[#allocation6 + $0x1a0] ss:$28 sps:$4 sm:$0xff]  }
 0x15b   : > { %3017 = vmatprep.subr.bf16.mxu0 %v6038_v33  ;;  %v6179_v33 = vld [vmem:[#allocation6 + $0x558] ss:$28 sps:$4 sm:$0xff]  }
 0x15c   : > { %5494 = vmatpush3.bf16.msra.mxu1 %v6160_v14  ;;  %v6219_v14 = vld [vmem:[#allocation6 + $0x8d8] ss:$28 sps:$4 sm:$0xff]  }
 0x15d   : > { %5495 = vmatprep.subr.bf16.mxu1 %v6164_v17  ;;  %v6220_v17 = vld [vmem:[#allocation6 + $0x718] ss:$28 sps:$4 sm:$0xff]  }
 0x15e   : > { %3018 = vmatpush1.bf16.msra.mxu0 %v6036_v37  ;;  %v6184_v37 = vld [vmem:[#allocation6 + $0x590] ss:$28 sps:$4 sm:$0xff]  }
 0x15f   : > { %3040 = vmatprep.subr.bf16.mxu0 %v6044_v39  ;;  %v6101_v39 = vld [vmem:[#allocation6 + $0x78] ss:$28 sps:$4 sm:$0xff]  }
 0x160   : > { %5496 = vmatpush3.bf16.msra.mxu1 %v6165_v22  ;;  %v6225_v22 = vld [vmem:[#allocation6 + $0x750] ss:$28 sps:$4 sm:$0xff]  }
 0x161   : > { %3020 = vmatmul.mubr.bf16.vlgmr.msra.gmra.mrb[0].mxu0 %v7109_v2  ;;  %5497 = vmatprep.subr.bf16.mxu1 %v6169_v24  ;;  %v6153_v24 = vld [vmem:[#allocation6 + $0x274] ss:$28 sps:$4 sm:$0xff]  }
 0x162   : > { %3041 = vmatpush1.bf16.msra.mxu0 %v6042_v40  ;;  %3029 = vmatprep.mubr.bf16.mxu0 %v7111_v5  ;;  %v6185_v40 = vld [vmem:[#allocation6 + $0x3d0] ss:$28 sps:$4 sm:$0xff]  }
 0x163   : > { %3042 = vmatprep.subr.bf16.mxu0 %v6050_v41  ;;  %v6109_v41 = vld [vmem:[#allocation6 + $0xb4] ss:$28 sps:$4 sm:$0xff]  }
 0x164   : > { %5498 = vmatpush3.bf16.msra.mxu1 %v6170_v26  ;;  %v6230_v26 = vld [vmem:[#allocation6 + $0x788] ss:$28 sps:$4 sm:$0xff]  }
 0x165   : > { %5499 = vmatprep.subr.bf16.mxu1 %v6174_v28  ;;  %v6158_v28 = vld [vmem:[#allocation6 + $0x2ac] ss:$28 sps:$4 sm:$0xff]  }
 0x166   : > { %3043 = vmatpush1.bf16.msra.mxu0 %v6048_v48  ;;  %v6194_v48 = vld [vmem:[#allocation6 + $0x600] ss:$28 sps:$4 sm:$0xff]  }
 0x167   : > { %3044 = vmatprep.subr.bf16.mxu0 %v6056_v52  ;;  %v6121_v52 = vld [vmem:[#allocation6 + $0x124] ss:$28 sps:$4 sm:$0xff]  }
 0x168   : > { %5500 = vmatpush3.bf16.msra.mxu1 %v6175_v30  ;;  %v6235_v30 = vld [vmem:[#allocation6 + $0x7c0] ss:$28 sps:$4 sm:$0xff]  }
 0x169   : > { %3030 = vmatmul.mubr.bf16.gmra.mrb[4].mxu0 %v7117_v16  ;;  %5513 = vmatprep.subr.bf16.mxu1 %v6179_v33  ;;  %v6239_v33 = vld [vmem:[#allocation6 + $0x9b8] ss:$28 sps:$4 sm:$0xff]  }
 0x16a   : > { %3045 = vmatpush1.bf16.msra.mxu0 %v6054_v53  ;;  %3072 = vmatprep.mubr.bf16.mxu0 %v6780_v21  ;;  %v6199_v53 = vld [vmem:[#allocation6 + $0x638] ss:$28 sps:$4 sm:$0xff]  }
 0x16b   : > { %3046 = vmatprep.subr.bf16.mxu0 %v6062_v55  ;;  %3550 = vmatmul.mubr.bf16.vlgmr.msra.gmra.mrb[8].mxu1 %v7069_v58  ;;  %v6119_v55 = vld [vmem:[#allocation6 + $0x120] ss:$28 sps:$4 sm:$0xff]  }
 0x16c   : > { %5514 = vmatpush3.bf16.msra.mxu1 %v6180_v36  ;;  %3557 = vmatprep.mubr.bf16.mxu1 %v7071_v62  ;;  %v6161_v36 = vld [vmem:[#allocation6 + $0x2e0] ss:$28 sps:$4 sm:$0xff]  }
 0x16d   : > { %5515 = vmatprep.subr.bf16.mxu1 %v6184_v37  ;;  %v6168_v37 = vld [vmem:[#allocation6 + $0x31c] ss:$28 sps:$4 sm:$0xff]  }
 0x16e   : > { %3047 = vmatpush1.bf16.msra.mxu0 %v6060_v1  ;;  %v6133_v1 = vld [vmem:[#allocation6 + $0x194] ss:$28 sps:$4 sm:$0xff]  }
 0x16f   : > { %3048 = vmatprep.subr.bf16.mxu0 %v6068_v7  ;;  %v6131_v7 = vld [vmem:[#allocation6 + $0x190] ss:$28 sps:$4 sm:$0xff]  }
 0x170   : > { %5516 = vmatpush3.bf16.msra.mxu1 %v6185_v40  ;;  %v6166_v40 = vld [vmem:[#allocation6 + $0x318] ss:$28 sps:$4 sm:$0xff]  }
 0x171   : > { %5517 = vmatprep.subr.bf16.mxu1 %v6189_v43  ;;  %v6249_v43 = vld [vmem:[#allocation6 + $0xa28] ss:$28 sps:$4 sm:$0xff]  }
 0x172   : > { %3049 = vmatpush1.bf16.msra.mxu0 %v6066_v8  ;;  %v6210_v8 = vld [vmem:[#allocation6 + $0x4e8] ss:$28 sps:$4 sm:$0xff]  }
 0x173   : > { %3050 = vmatprep.subr.bf16.mxu0 %v6074_v11  ;;  %3558 = vmatmul.mubr.bf16.gmra.mrb[12].mxu1 %v7077_v6  ;;  %v6215_v11 = vld [vmem:[#allocation6 + $0x520] ss:$28 sps:$4 sm:$0xff]  }
 0x174   : > { %5518 = vmatpush3.bf16.msra.mxu1 %v6190_v46  ;;  %3598 = vmatprep.mubr.bf16.mxu1 %v7064_v54  ;;  %v6171_v46 = vld [vmem:[#allocation6 + $0x350] ss:$28 sps:$4 sm:$0xff]  }
 0x175   : > { %5519 = vmatprep.subr.bf16.mxu1 %v6194_v48  ;;  %v6254_v48 = vld [vmem:[#allocation6 + $0xa60] ss:$28 sps:$4 sm:$0xff]  }
 0x176   : > { %3051 = vmatpush1.bf16.msra.mxu0 %v6072_v13  ;;  %v6143_v13 = vld [vmem:[#allocation6 + $0x204] ss:$28 sps:$4 sm:$0xff]  }
 0x177   : > { %3052 = vmatprep.subr.bf16.mxu0 %v6080_v18  ;;  %v6141_v18 = vld [vmem:[#allocation6 + $0x200] ss:$28 sps:$4 sm:$0xff]  }
 0x178   : > { %5520 = vmatpush3.bf16.msra.mxu1 %v6195_v51  ;;  %v6176_v51 = vld [vmem:[#allocation6 + $0x10] ss:$28 sps:$4 sm:$0xff]  }
 0x179   : > { %5521 = vmatprep.subr.bf16.mxu1 %v6199_v53  ;;  %v6259_v53 = vld [vmem:[#allocation6 + $0xa98] ss:$28 sps:$4 sm:$0xff]  }
 0x17a   : > { %3053 = vmatpush1.bf16.msra.mxu0 %v6078_v20  ;;  %v6224_v20 = vld [vmem:[#allocation6 + $0x910] ss:$28 sps:$4 sm:$0xff]  }
 0x17b   : > { %3054 = vmatprep.subr.bf16.mxu0 %v2864_v25  ;;  %v6229_v25 = vld [vmem:[#allocation6 + $0x948] ss:$28 sps:$4 sm:$0xff]  }
 0x17c   : > { %5522 = vmatpush3.bf16.msra.mxu1 %v6200_v56  ;;  %v6188_v56 = vld [vmem:[#allocation6 + $0x84] ss:$28 sps:$4 sm:$0xff]  }
 0x17d   : > { %5523 = vmatprep.subr.bf16.mxu1 %v6204_v60  ;;  %v6186_v60 = vld [vmem:[#allocation6 + $0x80] ss:$28 sps:$4 sm:$0xff]  }
 0x17e   : > { %3055 = vmatpush1.bf16.msra.mxu0 %v2861_v27  ;;  %v6151_v27 = vld [vmem:[#allocation6 + $0x270] ss:$28 sps:$4 sm:$0xff]  }
 0x17f   : > { %3093 = vmatprep.subr.bf16.mxu0 %v6091_v29  ;;  %v6234_v29 = vld [vmem:[#allocation6 + $0x980] ss:$28 sps:$4 sm:$0xff]  }
 0x180   : > { %5524 = vmatpush3.bf16.msra.mxu1 %v6205_v0  ;;  %v6267_v0 = vld [vmem:[#allocation6 + $0xb08] ss:$28 sps:$4 sm:$0xff]  }
 0x181   : > { %5315 = vmatmul.mubr.msk.bf16.vlgmr.msra.gmra.mrb[0].mxu0 %vm2850_vm1, %v7130_v50  ;;  %5525 = vmatprep.subr.bf16.mxu1 %v6209_v4  ;;  %v6198_v4 = vld [vmem:[#allocation6 + $0xf4] ss:$28 sps:$4 sm:$0xff]  }
 0x182   : > { %3094 = vmatpush1.bf16.msra.mxu0 %v6089_v31  ;;  %3082 = vmatprep.mubr.bf16.mxu0 %v6780_v21  ;;  %v6156_v31 = vld [vmem:[#allocation6 + $0x2a8] ss:$28 sps:$4 sm:$0xff]  }
 0x183   : > { %3095 = vmatprep.subr.bf16.mxu0 %v6097_v32  ;;  %v6163_v32 = vld [vmem:[#allocation6 + $0x2e4] ss:$28 sps:$4 sm:$0xff]  }
 0x184   : > { %5526 = vmatpush3.bf16.msra.mxu1 %v6210_v8  ;;  %v6196_v8 = vld [vmem:[#allocation6 + $0xf0] ss:$28 sps:$4 sm:$0xff]  }
 0x185   : > { %5527 = vmatprep.subr.bf16.mxu1 %v6214_v10  ;;  %v6275_v10 = vld [vmem:[#allocation6 + $0xb78] ss:$28 sps:$4 sm:$0xff]  }
 0x186   : > { %3096 = vmatpush1.bf16.msra.mxu0 %v6095_v35  ;;  %v6240_v35 = vld [vmem:[#allocation6 + $0x7f8] ss:$28 sps:$4 sm:$0xff]  }
 0x187   : > { %3097 = vmatprep.subr.bf16.mxu0 %v6103_v38  ;;  %v6244_v38 = vld [vmem:[#allocation6 + $0x9f0] ss:$28 sps:$4 sm:$0xff]  }
 0x188   : > { %5528 = vmatpush3.bf16.msra.mxu1 %v6215_v11  ;;  %v6201_v11 = vld [vmem:[#allocation6 + $0x128] ss:$28 sps:$4 sm:$0xff]  }
 0x189   : > { %5316 = vmatmul.mubr.msk.bf16.gmra.mrb[4].mxu0 %vm2850_vm1, %v7139_v3  ;;  %5541 = vmatprep.subr.bf16.mxu1 %v6219_v14  ;;  %v6283_v14 = vld [vmem:[#allocation6 + $0xbe8] ss:$28 sps:$4 sm:$0xff]  }
 0x18a   : > { %3098 = vmatpush1.bf16.msra.mxu0 %v6101_v39  ;;  %3125 = vmatprep.mubr.bf16.mxu0 %v7057_v15  ;;  %v6245_v39 = vld [vmem:[#allocation6 + $0x830] ss:$28 sps:$4 sm:$0xff]  }
 0x18b   : > { %3099 = vmatprep.subr.bf16.mxu0 %v6109_v41  ;;  %3599 = vmatmul.mubr.bf16.vlgmr.msra.gmra.mrb[16].mxu1 %v7085_v42  ;;  %v6173_v41 = vld [vmem:[#allocation6 + $0x354] ss:$28 sps:$4 sm:$0xff]  }
 0x18c   : > { %5542 = vmatpush3.bf16.msra.mxu1 %v6220_v17  ;;  %3606 = vmatprep.mubr.bf16.mxu1 %v7087_v45  ;;  %v6287_v17 = vld [vmem:[#allocation6 + $0xc20] ss:$0 sps:$4 sm:$0x11]  }
 0x18d   : > { %5543 = vmatprep.subr.bf16.mxu1 %v6224_v20  ;;  %v2879_v20 = vand.u32 %v6287_v17, %v7122_v34  ;;  %v6274_v17 = vld [vmem:[#allocation6 + $0x474] ss:$28 sps:$4 sm:$0xff]  }
 0x18e   : > { %3100 = vmatpush1.bf16.msra.mxu0 %v6107_v44  ;;  %v6250_v44 = vld [vmem:[#allocation6 + $0x868] ss:$28 sps:$4 sm:$0xff]  }
 0x18f   : > { %3101 = vmatprep.subr.bf16.mxu0 %v6115_v47  ;;  %v6178_v47 = vld [vmem:[#allocation6 + $0x14] ss:$28 sps:$4 sm:$0xff]  }
 0x190   : > { %5544 = vmatpush3.bf16.msra.mxu1 %v6225_v22  ;;  %v6218_v22 = vld [vmem:[#allocation6 + $0x1d4] ss:$28 sps:$4 sm:$0xff]  }
 0x191   : > { %5545 = vmatprep.subr.bf16.mxu1 %v6229_v25  ;;  %v6293_v25 = vld [vmem:[#allocation9 + $0x4] ss:$8 sps:$4 sm:$0xff]  }
 0x192   : > { %3102 = vmatpush1.bf16.msra.mxu0 %v6113_v49  ;;  %v6255_v49 = vld [vmem:[#allocation6 + $0x8a0] ss:$28 sps:$4 sm:$0xff]  }
 0x193   : > { %3103 = vmatprep.subr.bf16.mxu0 %v6121_v52  ;;  %3607 = vmatmul.mubr.bf16.gmra.mrb[20].mxu1 %v7095_v59  ;;  %v6183_v52 = vld [vmem:[#allocation6 + $0x4c] ss:$28 sps:$4 sm:$0xff]  }
 0x194   : > { %5546 = vmatpush3.bf16.msra.mxu1 %v6230_v26  ;;  %3647 = vmatprep.mubr.bf16.mxu1 %v7097_v61  ;;  %v6291_v26 = vld [vmem:[#allocation9] ss:$8 sps:$4 sm:$0xff]  }
 0x195   : > { %5547 = vmatprep.subr.bf16.mxu1 %v6234_v29  ;;  %v6228_v29 = vld [vmem:[#allocation6 + $0x244] ss:$28 sps:$4 sm:$0xff]  }
 0x196   : > { %3104 = vmatpush1.bf16.msra.mxu0 %v6119_v55  ;;  %v6181_v55 = vld [vmem:[#allocation6 + $0x48] ss:$28 sps:$4 sm:$0xff]  }
 0x197   : > { %3105 = vmatprep.subr.bf16.mxu0 %v6127_v57  ;;  %v6263_v57 = vld [vmem:[#allocation6 + $0xad0] ss:$28 sps:$4 sm:$0xff]  }
 0x198   : > { %5548 = vmatpush3.bf16.msra.mxu1 %v6235_v30  ;;  %v6297_v30 = vld [vmem:[#allocation9 + $0x10] ss:$8 sps:$4 sm:$0xff]  }
 0x199   : > { %5549 = vmatprep.subr.bf16.mxu1 %v6239_v33  ;;  %v6233_v33 = vld [vmem:[#allocation6 + $0x27c] ss:$28 sps:$4 sm:$0xff]  }
 0x19a   : > { %3106 = vmatpush1.bf16.msra.mxu0 %v6125_v63  ;;  %v6193_v63 = vld [vmem:[#allocation6 + $0xbc] ss:$28 sps:$4 sm:$0xff]  }
 0x19b   : > { %3107 = vmatprep.subr.bf16.mxu0 %v6133_v1  ;;  %v6191_v1 = vld [vmem:[#allocation6 + $0xb8] ss:$28 sps:$4 sm:$0xff]  }
 0x19c   : > { %5550 = vmatpush3.bf16.msra.mxu1 %v6240_v35  ;;  %v6303_v35 = vld [vmem:[#allocation9 + $0x20] ss:$8 sps:$4 sm:$0xff]  }
 0x19d   : > { %5551 = vmatprep.subr.bf16.mxu1 %v6244_v38  ;;  %v6238_v38 = vld [vmem:[#allocation6 + $0x2b4] ss:$28 sps:$4 sm:$0xff]  }
 0x19e   : > { %3108 = vmatpush1.bf16.msra.mxu0 %v6131_v7  ;;  %v6271_v7 = vld [vmem:[#allocation6 + $0xb40] ss:$28 sps:$4 sm:$0xff]  }
 0x19f   : > { %3109 = vmatprep.subr.bf16.mxu0 %v6138_v9  ;;  %v6203_v9 = vld [vmem:[#allocation6 + $0x12c] ss:$28 sps:$4 sm:$0xff]  }
 0x1a0   : > { %5552 = vmatpush3.bf16.msra.mxu1 %v6245_v39  ;;  %v6309_v39 = vld [vmem:[#allocation9 + $0x30] ss:$8 sps:$4 sm:$0xff]  }
 0x1a1   : > { %5553 = vmatprep.subr.bf16.mxu1 %v6249_v43  ;;  %v6243_v43 = vld [vmem:[#allocation6 + $0x2ec] ss:$28 sps:$4 sm:$0xff]  }
 0x1a2   : > { %3110 = vmatpush1.bf16.msra.mxu0 %v6136_v12  ;;  %v6208_v12 = vld [vmem:[#allocation6 + $0x164] ss:$28 sps:$4 sm:$0xff]  }
 0x1a3   : > { %3111 = vmatprep.subr.bf16.mxu0 %v6143_v13  ;;  %v6206_v13 = vld [vmem:[#allocation6 + $0x160] ss:$28 sps:$4 sm:$0xff]  }
 0x1a4   : > { %5554 = vmatpush3.bf16.msra.mxu1 %v6250_v44  ;;  %v6315_v44 = vld [vmem:[#allocation9 + $0x40] ss:$8 sps:$4 sm:$0xff]  }
 0x1a5   : > { %5555 = vmatprep.subr.bf16.mxu1 %v6254_v48  ;;  %v6248_v48 = vld [vmem:[#allocation6 + $0x324] ss:$28 sps:$4 sm:$0xff]  }
 0x1a6   : > { %3112 = vmatpush1.bf16.msra.mxu0 %v6141_v18  ;;  %v6213_v18 = vld [vmem:[#allocation6 + $0x19c] ss:$28 sps:$4 sm:$0xff]  }
 0x1a7   : > { %3113 = vmatprep.subr.bf16.mxu0 %v6148_v19  ;;  %v6211_v19 = vld [vmem:[#allocation6 + $0x198] ss:$28 sps:$4 sm:$0xff]  }
 0x1a8   : > { %5556 = vmatpush3.bf16.msra.mxu1 %v6255_v49  ;;  %v6321_v49 = vld [vmem:[#allocation9 + $0x50] ss:$8 sps:$4 sm:$0xff]  }
 0x1a9   : > { %5579 = vmatprep.subr.bf16.mxu1 %v6259_v53 }
 0x1aa   : > { %3114 = vmatpush1.bf16.msra.mxu0 %v6146_v23  ;;  %v6216_v23 = vld [vmem:[#allocation6 + $0x1d0] ss:$28 sps:$4 sm:$0xff]  }
 0x1ab   : > { %3115 = vmatprep.subr.bf16.mxu0 %v6153_v24  ;;  %3648 = vmatmul.mubr.bf16.vlgmr.msra.gmra.mrb[24].mxu1 %v7109_v2  ;;  %v6223_v24 = vld [vmem:[#allocation6 + $0x20c] ss:$28 sps:$4 sm:$0xff]  }
 0x1ac   : > { %5580 = vmatpush3.bf16.msra.mxu1 %v6259_v53  ;;  %3655 = vmatprep.mubr.bf16.mxu1 %v7111_v5  ;;  %v6253_v53 = vld [vmem:[#allocation6 + $0x35c] ss:$28 sps:$4 sm:$0xff]  }
 0x1ad   : > { %5581 = vmatprep.subr.bf16.mxu1 %v6263_v57 }
 0x1ae   : > { %3116 = vmatpush1.bf16.msra.mxu0 %v6151_v27  ;;  %v6221_v27 = vld [vmem:[#allocation6 + $0x208] ss:$28 sps:$4 sm:$0xff]  }
 0x1af   : > { %3117 = vmatprep.subr.bf16.mxu0 %v6158_v28  ;;  %v6299_v28 = vld [vmem:[#allocation9 + $0x14] ss:$8 sps:$4 sm:$0xff]  }
 0x1b0   : > { %5582 = vmatpush3.bf16.msra.mxu1 %v6263_v57  ;;  %v6335_v57 = vld [vmem:[#allocation9 + $0x74] ss:$8 sps:$4 sm:$0xff]  }
 0x1b1   : > { %5583 = vmatprep.subr.bf16.mxu1 %v6267_v0 }
 0x1b2   : > { %3118 = vmatpush1.bf16.msra.mxu0 %v6156_v31  ;;  %v6226_v31 = vld [vmem:[#allocation6 + $0x240] ss:$28 sps:$4 sm:$0xff]  }
 0x1b3   : > { %3119 = vmatprep.subr.bf16.mxu0 %v6163_v32  ;;  %3656 = vmatmul.mubr.bf16.gmra.mrb[28].mxu1 %v7117_v16  ;;  %v6305_v32 = vld [vmem:[#allocation9 + $0x24] ss:$8 sps:$4 sm:$0xff]  }
 0x1b4   : > { %5584 = vmatpush3.bf16.msra.mxu1 %v6267_v0  ;;  %5595 = vmatprep.mubr.msk.bf16.mxu1 %vm2850_vm1, %v7130_v50  ;;  %v6256_v0 = vld [vmem:[#allocation6 + $0x390] ss:$28 sps:$4 sm:$0xff]  }
 0x1b5   : > { %5585 = vmatprep.subr.bf16.mxu1 %v6271_v7 }
 0x1b6   : > { %3120 = vmatpush1.bf16.msra.mxu0 %v6161_v36  ;;  %v6231_v36 = vld [vmem:[#allocation6 + $0x278] ss:$28 sps:$4 sm:$0xff]  }
 0x1b7   : > { %3121 = vmatprep.subr.bf16.mxu0 %v6168_v37  ;;  %v6311_v37 = vld [vmem:[#allocation9 + $0x34] ss:$8 sps:$4 sm:$0xff]  }
 0x1b8   : > { %5586 = vmatpush3.bf16.msra.mxu1 %v6271_v7  ;;  %v6339_v7 = vld [vmem:[#allocation9 + $0x80] ss:$8 sps:$4 sm:$0xff]  }
 0x1b9   : > { %5587 = vmatprep.subr.bf16.mxu1 %v6275_v10 }
 0x1ba   : > { %3122 = vmatpush1.bf16.msra.mxu0 %v6166_v40  ;;  %v6236_v40 = vld [vmem:[#allocation6 + $0x2b0] ss:$28 sps:$4 sm:$0xff]  }
 0x1bb   : > { %3123 = vmatprep.subr.bf16.mxu0 %v6173_v41  ;;  %v6317_v41 = vld [vmem:[#allocation9 + $0x44] ss:$8 sps:$4 sm:$0xff]  }
 0x1bc   : > { %5588 = vmatpush3.bf16.msra.mxu1 %v6275_v10  ;;  %v6266_v10 = vld [vmem:[#allocation6 + $0x404] ss:$28 sps:$4 sm:$0xff]  }
 0x1be   : > { %3124 = vmatpush1.bf16.msra.mxu0 %v6171_v46  ;;  %v6241_v46 = vld [vmem:[#allocation6 + $0x2e8] ss:$28 sps:$4 sm:$0xff]  }
 0x1bf   : > { %3305 = vmatprep.subr.bf16.mxu0 %v6178_v47  ;;  %v6323_v47 = vld [vmem:[#allocation9 + $0x54] ss:$8 sps:$4 sm:$0xff]  }
 0x1c1   : > { %3126 = vmatmul.mubr.bf16.vlgmr.msra.gmra.mrb[8].mxu0 %v7069_v58 }
 0x1c2   : > { %3306 = vmatpush1.bf16.msra.mxu0 %v6176_v51  ;;  %3135 = vmatprep.mubr.bf16.mxu0 %v7071_v62  ;;  %v6246_v51 = vld [vmem:[#allocation6 + $0x320] ss:$28 sps:$4 sm:$0xff]  }
 0x1c3   : > { %3307 = vmatprep.subr.bf16.mxu0 %v6183_v52  ;;  %v6329_v52 = vld [vmem:[#allocation9 + $0x64] ss:$8 sps:$4 sm:$0xff]  }
 0x1c6   : > { %3308 = vmatpush1.bf16.msra.mxu0 %v6181_v55  ;;  %v6327_v55 = vld [vmem:[#allocation9 + $0x60] ss:$8 sps:$4 sm:$0xff]  }
 0x1c7   : > { %3309 = vmatprep.subr.bf16.mxu0 %v6188_v56  ;;  %v6251_v56 = vld [vmem:[#allocation6 + $0x358] ss:$28 sps:$4 sm:$0xff]  }
 0x1c9   : > { %3136 = vmatmul.mubr.bf16.gmra.mrb[12].mxu0 %v7077_v6 }
 0x1ca   : > { %3310 = vmatpush1.bf16.msra.mxu0 %v6186_v60  ;;  %3337 = vmatprep.mubr.bf16.mxu0 %v7057_v15  ;;  %v6279_v15 = vld [vmem:[#allocation6 + $0xbb0] ss:$28 sps:$4 sm:$0xff]  }
 0x1cb   : > { %3311 = vmatprep.subr.bf16.mxu0 %v6193_v63  ;;  %5589 = vmatprep.subr.bf16.mxu1 %v6279_v15  ;;  %v6258_v60 = vld [vmem:[#allocation6 + $0x394] ss:$28 sps:$4 sm:$0xff]   ;;  %v6333_v63 = vld [vmem:[#allocation9 + $0x70] ss:$8 sps:$4 sm:$0xff]  }
 0x1cc   : > { %5590 = vmatpush3.bf16.msra.mxu1 %v6279_v15  ;;  %v6264_v15 = vld [vmem:[#allocation6 + $0x400] ss:$28 sps:$4 sm:$0xff]  }
 0x1cd   : > { %5591 = vmatprep.subr.bf16.mxu1 %v6283_v14 }
 0x1ce   : > { %3312 = vmatpush1.bf16.msra.mxu0 %v6191_v1  ;;  %v6262_v1 = vld [vmem:[#allocation6 + $0x3cc] ss:$28 sps:$4 sm:$0xff]  }
 0x1cf   : > { %3313 = vmatprep.subr.bf16.mxu0 %v6198_v4  ;;  %v6341_v4 = vld [vmem:[#allocation9 + $0x84] ss:$8 sps:$4 sm:$0xff]  }
 0x1d0   : > { %5592 = vmatpush3.bf16.msra.mxu1 %v6283_v14  ;;  %v6268_v14 = vld [vmem:[#allocation6 + $0x438] ss:$28 sps:$4 sm:$0xff]  }
 0x1d1   : > { %5593 = vmatprep.subr.bf16.mxu1 %v2879_v20 }
 0x1d2   : > { %3314 = vmatpush1.bf16.msra.mxu0 %v6196_v8  ;;  %v6260_v8 = vld [vmem:[#allocation6 + $0x3c8] ss:$28 sps:$4 sm:$0xff]  }
 0x1d3   : > { %3315 = vmatprep.subr.bf16.mxu0 %v6203_v9  ;;  %v6347_v9 = vld [vmem:[#allocation9 + $0x94] ss:$8 sps:$4 sm:$0xff]  }
 0x1d4   : > { %5594 = vmatpush3.bf16.msra.mxu1 %v2879_v20  ;;  %v6365_v20 = vld [vmem:[#allocation9 + $0xc4] ss:$8 sps:$4 sm:$0xff]  }
 0x1d5   : > { %4553 = vmatprep.subr.bf16.mxu1 %v6293_v25  ;;  %v6369_v25 = vld [vmem:[#allocation9 + $0xd0] ss:$8 sps:$4 sm:$0xff]  }
 0x1d6   : > { %3316 = vmatpush1.bf16.msra.mxu0 %v6201_v11  ;;  %v6345_v11 = vld [vmem:[#allocation9 + $0x90] ss:$8 sps:$4 sm:$0xff]  }
 0x1d7   : > { %3317 = vmatprep.subr.bf16.mxu0 %v6208_v12  ;;  %5596 = vmatmul.mubr.msk.bf16.vlgmr.msra.gmra.mrb[32].mxu1 %vm2850_vm1, %v7139_v3  ;;  %v6270_v12 = vld [vmem:[#allocation6 + $0x43c] ss:$28 sps:$4 sm:$0xff]  }
 0x1d8   : > { %4554 = vmatpush1.bf16.msra.mxu1 %v6291_v26  ;;  %v6280_v26 = vld [vmem:[#allocation6 + $0x4e0] ss:$28 sps:$4 sm:$0xff]  }
 0x1d9   : > { %4555 = vmatprep.subr.bf16.mxu1 %v6299_v28  ;;  %v6286_v28 = vld [vmem:[#allocation6 + $0x51c] ss:$28 sps:$4 sm:$0xff]  }
 0x1da   : > { %3318 = vmatpush1.bf16.msra.mxu0 %v6206_v13  ;;  %v6353_v13 = vld [vmem:[#allocation9 + $0xa4] ss:$8 sps:$4 sm:$0xff]  }
 0x1db   : > { %3319 = vmatprep.subr.bf16.mxu0 %v6213_v18  ;;  %v6357_v18 = vld [vmem:[#allocation9 + $0xb0] ss:$8 sps:$4 sm:$0xff]  }
 0x1dc   : > { %4556 = vmatpush1.bf16.msra.mxu1 %v6297_v30  ;;  %v6284_v30 = vld [vmem:[#allocation6 + $0x518] ss:$28 sps:$4 sm:$0xff]  }
 0x1dd   : > { %4557 = vmatprep.subr.bf16.mxu1 %v6305_v32  ;;  %v6290_v32 = vld [vmem:[#allocation6 + $0x554] ss:$28 sps:$4 sm:$0xff]  }
 0x1de   : > { %3320 = vmatpush1.bf16.msra.mxu0 %v6211_v19  ;;  %v6272_v19 = vld [vmem:[#allocation6 + $0x470] ss:$28 sps:$4 sm:$0xff]  }
 0x1df   : > { %3321 = vmatprep.subr.bf16.mxu0 %v6218_v22  ;;  %v6278_v22 = vld [vmem:[#allocation6 + $0x4ac] ss:$28 sps:$4 sm:$0xff]  }
 0x1e0   : > { %4558 = vmatpush1.bf16.msra.mxu1 %v6303_v35  ;;  %v6288_v35 = vld [vmem:[#allocation6 + $0x550] ss:$28 sps:$4 sm:$0xff]  }
 0x1e1   : > { %4559 = vmatprep.subr.bf16.mxu1 %v6311_v37  ;;  %v6296_v37 = vld [vmem:[#allocation6 + $0x58c] ss:$28 sps:$4 sm:$0xff]  }
 0x1e2   : > { %3322 = vmatpush1.bf16.msra.mxu0 %v6216_v23  ;;  %v6276_v23 = vld [vmem:[#allocation6 + $0x4a8] ss:$28 sps:$4 sm:$0xff]  }
 0x1e3   : > { %3323 = vmatprep.subr.bf16.mxu0 %v6223_v24  ;;  %v6371_v24 = vld [vmem:[#allocation9 + $0xd4] ss:$8 sps:$4 sm:$0xff]  }
 0x1e4   : > { %4560 = vmatpush1.bf16.msra.mxu1 %v6309_v39  ;;  %v6302_v39 = vld [vmem:[#allocation6 + $0x5c4] ss:$28 sps:$4 sm:$0xff]  }
 0x1e5   : > { %4561 = vmatprep.subr.bf16.mxu1 %v6317_v41  ;;  %v6308_v41 = vld [vmem:[#allocation6 + $0x5fc] ss:$28 sps:$4 sm:$0xff]  }
 0x1e6   : > { %3324 = vmatpush1.bf16.msra.mxu0 %v6221_v27  ;;  %v6377_v27 = vld [vmem:[#allocation9 + $0xe4] ss:$8 sps:$4 sm:$0xff]  }
 0x1e7   : > { %3325 = vmatprep.subr.bf16.mxu0 %v6228_v29  ;;  %v6375_v29 = vld [vmem:[#allocation9 + $0xe0] ss:$8 sps:$4 sm:$0xff]  }
 0x1e8   : > { %4562 = vmatpush1.bf16.msra.mxu1 %v6315_v44  ;;  %v6314_v44 = vld [vmem:[#allocation6 + $0x634] ss:$28 sps:$4 sm:$0xff]  }
 0x1e9   : > { %4563 = vmatprep.subr.bf16.mxu1 %v6323_v47  ;;  %v6320_v47 = vld [vmem:[#allocation6 + $0x66c] ss:$28 sps:$4 sm:$0xff]  }
 0x1ea   : > { %3326 = vmatpush1.bf16.msra.mxu0 %v6226_v31  ;;  %v6383_v31 = vld [vmem:[#allocation9 + $0xf4] ss:$8 sps:$4 sm:$0xff]  }
 0x1eb   : > { %3327 = vmatprep.subr.bf16.mxu0 %v6233_v33  ;;  %v6381_v33 = vld [vmem:[#allocation9 + $0xf0] ss:$8 sps:$4 sm:$0xff]  }
 0x1ec   : > { %4564 = vmatpush1.bf16.msra.mxu1 %v6321_v49  ;;  %v6326_v49 = vld [vmem:[#allocation6 + $0x6a4] ss:$28 sps:$4 sm:$0xff]  }
 0x1ed   : > { %4565 = vmatprep.subr.bf16.mxu1 %v6329_v52  ;;  %v6332_v52 = vld [vmem:[#allocation6 + $0x6dc] ss:$28 sps:$4 sm:$0xff]  }
 0x1ee   : > { %3328 = vmatpush1.bf16.msra.mxu0 %v6231_v36  ;;  %v6392_v36 = vld [vmem:[#allocation9 + $0x104] ss:$8 sps:$4 sm:$0xff]  }
 0x1ef   : > { %3329 = vmatprep.subr.bf16.mxu0 %v6238_v38  ;;  %v6294_v38 = vld [vmem:[#allocation6 + $0x588] ss:$28 sps:$4 sm:$0xff]  }
 0x1f0   : > { %4566 = vmatpush1.bf16.msra.mxu1 %v6327_v55 }
 0x1f1   : > { %4567 = vmatprep.subr.bf16.mxu1 %v6335_v57  ;;  %v6330_v57 = vld [vmem:[#allocation6 + $0x6d8] ss:$28 sps:$4 sm:$0xff]  }
 0x1f2   : > { %3330 = vmatpush1.bf16.msra.mxu0 %v6236_v40  ;;  %v6300_v40 = vld [vmem:[#allocation6 + $0x5c0] ss:$28 sps:$4 sm:$0xff]  }
 0x1f3   : > { %3331 = vmatprep.subr.bf16.mxu0 %v6243_v43  ;;  %v6306_v43 = vld [vmem:[#allocation6 + $0x5f8] ss:$28 sps:$4 sm:$0xff]  }
 0x1f4   : > { %4568 = vmatpush1.bf16.msra.mxu1 %v6333_v63  ;;  %v6338_v63 = vld [vmem:[#allocation6 + $0x714] ss:$28 sps:$4 sm:$0xff]  }
 0x1f5   : > { %4569 = vmatprep.subr.bf16.mxu1 %v6341_v4 }
 0x1f6   : > { %3332 = vmatpush1.bf16.msra.mxu0 %v6241_v46  ;;  %v6312_v46 = vld [vmem:[#allocation6 + $0x630] ss:$28 sps:$4 sm:$0xff]  }
 0x1f7   : > { %3333 = vmatprep.subr.bf16.mxu0 %v6248_v48  ;;  %v6318_v48 = vld [vmem:[#allocation6 + $0x668] ss:$28 sps:$4 sm:$0xff]  }
 0x1f8   : > { %4570 = vmatpush1.bf16.msra.mxu1 %v6339_v7 }
 0x1f9   : > { %4571 = vmatprep.subr.bf16.mxu1 %v6347_v9  ;;  %v6342_v9 = vld [vmem:[#allocation6 + $0x748] ss:$28 sps:$4 sm:$0xff]  }
 0x1fa   : > { %3334 = vmatpush1.bf16.msra.mxu0 %v6246_v51  ;;  %v6324_v51 = vld [vmem:[#allocation6 + $0x6a0] ss:$28 sps:$4 sm:$0xff]  }
 0x1fb   : > { %3335 = vmatprep.subr.bf16.mxu0 %v6253_v53 }
 0x1fc   : > { %4572 = vmatpush1.bf16.msra.mxu1 %v6345_v11  ;;  %v6350_v11 = vld [vmem:[#allocation6 + $0x784] ss:$28 sps:$4 sm:$0xff]  }
 0x1fd   : > { %4573 = vmatprep.subr.bf16.mxu1 %v6353_v13  ;;  %v6356_v13 = vld [vmem:[#allocation6 + $0x7bc] ss:$28 sps:$4 sm:$0xff]  }
 0x1fe   : > { %3336 = vmatpush1.bf16.msra.mxu0 %v6251_v56 }
 0x1ff   : > { %3358 = vmatprep.subr.bf16.mxu0 %v6258_v60 }
 0x201   : > { %3338 = vmatmul.mubr.bf16.vlgmr.msra.gmra.mrb[16].mxu0 %v7069_v58  ;;  %v6351_v58 = vld [vmem:[#allocation9 + $0xa0] ss:$8 sps:$4 sm:$0xff]  }
 0x202   : > { %3359 = vmatpush1.bf16.msra.mxu0 %v6256_v0  ;;  %3347 = vmatprep.mubr.bf16.mxu0 %v7071_v62  ;;  %v6359_v62 = vld [vmem:[#allocation9 + $0xb4] ss:$8 sps:$4 sm:$0xff]   ;;  %v6336_v0 = vld [vmem:[#allocation6 + $0x710] ss:$28 sps:$4 sm:$0xff]  }
 0x203   : > { %3360 = vmatprep.subr.bf16.mxu0 %v6262_v1  ;;  %4574 = vmatpush1.bf16.msra.mxu1 %v6351_v58  ;;  %v6344_v1 = vld [vmem:[#allocation6 + $0x74c] ss:$28 sps:$4 sm:$0xff]  }
 0x204   : > { %4575 = vmatprep.subr.bf16.mxu1 %v6359_v62  ;;  %v6360_v62 = vld [vmem:[#allocation6 + $0x7f0] ss:$28 sps:$4 sm:$0xff]  }
 0x206   : > { %3361 = vmatpush1.bf16.msra.mxu0 %v6260_v8 }
 0x207   : > { %3362 = vmatprep.subr.bf16.mxu0 %v6266_v10  ;;  %4576 = vmatpush1.bf16.msra.mxu1 %v6357_v18 }
 0x208   : > { %4577 = vmatprep.subr.bf16.mxu1 %v6365_v20  ;;  %v6366_v20 = vld [vmem:[#allocation6 + $0x828] ss:$28 sps:$4 sm:$0xff]  }
 0x209   : > { %3348 = vmatmul.mubr.bf16.gmra.mrb[20].mxu0 %v7077_v6  ;;  %v6363_v6 = vld [vmem:[#allocation9 + $0xc0] ss:$8 sps:$4 sm:$0xff]  }
 0x20a   : > { %3363 = vmatpush1.bf16.msra.mxu0 %v6264_v15  ;;  %3390 = vmatprep.mubr.bf16.mxu0 %v7064_v54  ;;  %v6282_v54 = vld [vmem:[#allocation6 + $0x4e4] ss:$28 sps:$4 sm:$0xff]   ;;  %v817_v15 = vlaneseq }
 0x20b   : > { %3364 = vmatprep.subr.bf16.mxu0 %v6270_v12  ;;  %4578 = vmatpush1.bf16.msra.mxu1 %v6363_v6  ;;  %v6348_v12 = vld [vmem:[#allocation6 + $0x780] ss:$28 sps:$4 sm:$0xff]  }
 0x20c   : > { %4579 = vmatprep.subr.bf16.mxu1 %v6371_v24  ;;  %v7194_v58 = vshrl.u32 %v817_v15, 7 }
 0x20e   : > { %3365 = vmatpush1.bf16.msra.mxu0 %v6268_v14  ;;  %v6362_v14 = vld [vmem:[#allocation6 + $0x7f4] ss:$28 sps:$4 sm:$0xff]   ;;  %v823_v18 = vsub.s32 1, %v7194_v58 }
 0x20f   : > { %3366 = vmatprep.subr.bf16.mxu0 %v6274_v17  ;;  %4580 = vmatpush1.bf16.msra.mxu1 %v6369_v25  ;;  %v7199_v17 = vld [vmem:[#allocation8] sm:$0xff] }
 0x210   : > { %4581 = vmatprep.subr.bf16.mxu1 %v6377_v27  ;;  %v6372_v27 = vld [vmem:[#allocation6 + $0x860] ss:$28 sps:$4 sm:$0xff]  }
 0x212   : > { %3367 = vmatpush1.bf16.msra.mxu0 %v6272_v19  ;;  %v6368_v19 = vld [vmem:[#allocation6 + $0x82c] ss:$28 sps:$4 sm:$0xff]  }
 0x213   : > { %3368 = vmatprep.subr.bf16.mxu0 %v6278_v22  ;;  %4582 = vmatpush1.bf16.msra.mxu1 %v6375_v29  ;;  %v6374_v22 = vld [vmem:[#allocation6 + $0x864] ss:$28 sps:$4 sm:$0xff]  }
 0x214   : > { %4583 = vmatprep.subr.bf16.mxu1 %v6383_v31  ;;  %v6380_v31 = vld [vmem:[#allocation6 + $0x89c] ss:$28 sps:$4 sm:$0xff]  }
 0x216   : > { %3369 = vmatpush1.bf16.msra.mxu0 %v6276_v23 }
 0x217   : > { %3370 = vmatprep.subr.bf16.mxu0 %v6282_v54  ;;  %4584 = vmatpush1.bf16.msra.mxu1 %v6381_v33  ;;  %v7208_v54 = vstv %s3741_s28 }
 0x218   : > { %4606 = vmatprep.subr.bf16.mxu1 %v6392_v36 }
 0x21a   : > { %3371 = vmatpush1.bf16.msra.mxu0 %v6280_v26 }
 0x21b   : > { %3372 = vmatprep.subr.bf16.mxu0 %v6286_v28 }
 0x21e   : > { %3373 = vmatpush1.bf16.msra.mxu0 %v6284_v30  ;;  %v7176_v53 = vpop.f32.mrb[0].mxu1 }
 0x21f   : > { %3374 = vmatprep.subr.bf16.mxu0 %v6290_v32  ;;  %v7178_v55 = vpop.f32.mrb[1].mxu1 }
 0x220   : > { %v7180_v56 = vpop.f32.mrb[2].mxu1 }
 0x221   : > { %v7182_v60 = vpop.f32.mrb[3].mxu1 }
 0x222   : > { %3375 = vmatpush1.bf16.msra.mxu0 %v6288_v35 }
 0x223   : > { %3376 = vmatprep.subr.bf16.mxu0 %v6296_v37 }
 0x226   : > { %3377 = vmatpush1.bf16.msra.mxu0 %v6294_v38  ;;  %v7184_v4 = vpop.f32.mrb[4].mxu1 }
 0x227   : > { %3378 = vmatprep.subr.bf16.mxu0 %v6302_v39  ;;  %v7186_v7 = vpop.f32.mrb[5].mxu1 }
 0x228   : > { %v7189_v8 = vpop.f32.mrb[6].mxu1 }
 0x229   : > { %v7192_v10 = vpop.f32.mrb[7].mxu1 }
 0x22a   : > { %3379 = vmatpush1.bf16.msra.mxu0 %v6300_v40 }
 0x22b   : > { %3380 = vmatprep.subr.bf16.mxu0 %v6308_v41 }
 0x22e   : > { %3381 = vmatpush1.bf16.msra.mxu0 %v6306_v43 }
 0x22f   : > { %3382 = vmatprep.subr.bf16.mxu0 %v6314_v44  ;;  %v6378_v44 = vld [vmem:[#allocation6 + $0x898] ss:$28 sps:$4 sm:$0xff]  }
 0x232   : > { %3383 = vmatpush1.bf16.msra.mxu0 %v6312_v46 }
 0x233   : > { %3384 = vmatprep.subr.bf16.mxu0 %v6320_v47 }
 0x236   : > { %3385 = vmatpush1.bf16.msra.mxu0 %v6318_v48 }
 0x237   : > { %3386 = vmatprep.subr.bf16.mxu0 %v6326_v49 }
 0x23a   : > { %3387 = vmatpush1.bf16.msra.mxu0 %v6324_v51  ;;  %v6386_v51 = vld [vmem:[#allocation6 + $0x8d4] ss:$28 sps:$4 sm:$0xff]  }
 0x23b   : > { %3388 = vmatprep.subr.bf16.mxu0 %v6332_v52  ;;  %v6396_v52 = vld [vmem:[#allocation9 + $0x110] ss:$8 sps:$4 sm:$0xff]  }
 0x23e   : > { %3389 = vmatpush1.bf16.msra.mxu0 %v6330_v57  ;;  %v5501_v32 = vpop.f32.mrb[8].mxu1 }
 0x23f   : > { %3411 = vmatprep.subr.bf16.mxu0 %v6338_v63  ;;  %v5502_v36 = vpop.f32.mrb[9].mxu1 }
 0x240   : > { %v7211_v39 = vadd.f32 %v5502_v36, %v5501_v32  ;;  %v5504_v40 = vpop.f32.mrb[10].mxu1 }
 0x241   : > { %3391 = vmatmul.mubr.bf16.vlgmr.msra.gmra.mrb[16].mxu0 %v7085_v42  ;;  %v6354_v42 = vld [vmem:[#allocation6 + $0x7b8] ss:$28 sps:$4 sm:$0xff]   ;;  %v5505_v46 = vpop.f32.mrb[11].mxu1 }
 0x242   : > { %3412 = vmatpush1.bf16.msra.mxu0 %v6336_v0  ;;  %3400 = vmatprep.mubr.bf16.mxu0 %v7087_v45  ;;  %v819_v45 = vsub.s32 0, %v7194_v58 }
 0x243   : > { %3413 = vmatprep.subr.bf16.mxu0 %v6344_v1  ;;  %v7236_v1 = vadd.f32 %v5505_v46, %v5504_v40 }
 0x246   : > { %3414 = vmatpush1.bf16.msra.mxu0 %v6342_v9 }
 0x247   : > { %3415 = vmatprep.subr.bf16.mxu0 %v6350_v11 }
 0x249   : > { %3401 = vmatmul.mubr.bf16.gmra.mrb[20].mxu0 %v7095_v59  ;;  %v820_v59 = vrot.slane %v7199_v17, %v819_v45 }
 0x24a   : > { %3416 = vmatpush1.bf16.msra.mxu0 %v6348_v12  ;;  %3443 = vmatprep.mubr.bf16.mxu0 %v7097_v61  ;;  %v824_v61 = vrot.slane %v7199_v17, %v823_v18 }
 0x24b   : > { %3417 = vmatprep.subr.bf16.mxu0 %v6356_v13 }
 0x24e   : > { %3418 = vmatpush1.bf16.msra.mxu0 %v6354_v42 }
 0x24f   : > { %3419 = vmatprep.subr.bf16.mxu0 %v6362_v14 }
 0x252   : > { %3420 = vmatpush1.bf16.msra.mxu0 %v6360_v62 }
 0x253   : > { %3421 = vmatprep.subr.bf16.mxu0 %v6368_v19  ;;  %v6384_v19 = vld [vmem:[#allocation6 + $0x8d0] ss:$28 sps:$4 sm:$0xff]  }
 0x254   : > { %v3074_v6 = vpop.f32.mrb[0].mxu0 }
 0x255   : > { %v5599_v23 = vadd.f32 %v3074_v6, %v820_v59  ;;  %v3076_v24 = vpop.f32.mrb[1].mxu0 }
 0x256   : > { %v5600_v25 = vadd.f32 %v3076_v24, %v824_v61  ;;  %v3078_v26 = vpop.f32.mrb[2].mxu0  ;;  %3422 = vmatpush1.bf16.msra.mxu0 %v6366_v20  ;;  %v6389_v24 = vld [vmem:[#allocation6 + $0x90c] ss:$28 sps:$4 sm:$0xff]  }
 0x257   : > { %v3713_v28 = vmax.f32 %v5599_v23, 0.0  ;;  %v5601_v29 = vadd.f32 %v3078_v26, %v820_v59  ;;  %v3080_v30 = vpop.f32.mrb[3].mxu0  ;;  %3423 = vmatprep.subr.bf16.mxu0 %v6374_v22 }
 0x258   : > { %v3714_v33 = vmax.f32 %v5600_v25, 0.0  ;;  %v5602_v35 = vadd.f32 %v3080_v30, %v824_v61  ;;  %v5507_v25 = vpop.f32.mrb[12].mxu1 }
 0x259   : > { %v3771_v37 = vsub.f32 %v3713_v28, %v7208_v54  ;;  %v3720_v38 = vmax.f32 %v5601_v29, 0.0  ;;  %vm7214_vm2 = vcmp.gt.f32.partialorder %v3713_v28, 0.0  ;;  %v6390_v29 = vld [vmem:[#allocation9 + $0x100] ss:$8 sps:$4 sm:$0xff]   ;;  %v5508_v30 = vpop.f32.mrb[13].mxu1 }
 0x25a   : > { %v3772_v41 = vsub.f32 %v3714_v33, %v7208_v54  ;;  %v3721_v43 = vmax.f32 %v5602_v35, 0.0  ;;  %3424 = vmatpush1.bf16.msra.mxu0 %v6372_v27  ;;  %vm7223_vm4 = vcmp.gt.f32.partialorder %v3714_v33, 0.0  ;;  %v6398_v33 = vld [vmem:[#allocation9 + $0x114] ss:$8 sps:$4 sm:$0xff]   ;;  %v7243_v35 = vadd.f32 %v5508_v30, %v5507_v25  ;;  %v5510_v36 = vpop.f32.mrb[14].mxu1 }
 0x25b   : > { %vm7218_vm3 = vcmp.gt.f32.partialorder %v3720_v38, 0.0  ;;  %v3778_v49 = vsub.f32 %v3720_v38, %v7208_v54  ;;  %3425 = vmatprep.subr.bf16.mxu0 %v6380_v31  ;;  %v3799_v9 = vmax.f32 %v3771_v37, 0.0  ;;  %v6414_v25 = vld [vmem:[#allocation9 + $0x140] ss:$8 sps:$4 sm:$0xff]   ;;  %v6420_v30 = vld [vmem:[#allocation9 + $0x150] ss:$8 sps:$4 sm:$0xff]  }
 0x25c   : > { %vm5438_vm5 = vmpackc.low %vm7218_vm3, %vm7214_vm2  ;;  %vm7231_vm6 = vcmp.gt.f32.partialorder %v3721_v43, 0.0  ;;  %v3779_v63 = vsub.f32 %v3721_v43, %v7208_v54  ;;  %v3084_v0 = vpop.f32.mrb[4].mxu0  ;;  %v3800_v13 = vmax.f32 %v3772_v41, 0.0 }
 0x25d   : > { %v3806_v11 = vmax.f32 %v3778_v49, 0.0  ;;  %v5603_v15 = vadd.f32 %v3084_v0, %v820_v59  ;;  %v3086_v12 = vpop.f32.mrb[5].mxu0  ;;  %vm5435_vm7 = vmpackc.low %vm7231_vm6, %vm7223_vm4  ;;  %v6431_v49 = vld [vmem:[#allocation6 + $0xa94] ss:$28 sps:$4 sm:$0xff]  }
 0x25e   : > { %v3807_v42 = vmax.f32 %v3779_v63, 0.0  ;;  %v5604_v14 = vadd.f32 %v3086_v12, %v824_v61  ;;  %v3088_v62 = vpop.f32.mrb[6].mxu0  ;;  %3426 = vmatpush1.bf16.msra.mxu0 %v6378_v44  ;;  %v6395_v44 = vld [vmem:[#allocation6 + $0x944] ss:$28 sps:$4 sm:$0xff]   ;;  %v6404_v63 = vld [vmem:[#allocation9 + $0x124] ss:$8 sps:$4 sm:$0xff]  }
 0x25f   : > { %v5439_v20 = vpack.c.bf16 %v3806_v11, %v3799_v9  ;;  %v3727_v22 = vmax.f32 %v5603_v15, 0.0  ;;  %v5605_v6 = vadd.f32 %v3088_v62, %v820_v59  ;;  %v3090_v23 = vpop.f32.mrb[7].mxu0  ;;  %3427 = vmatprep.subr.bf16.mxu0 %v6386_v51  ;;  %v6387_v59 = vld [vmem:[#allocation6 + $0x908] ss:$28 sps:$4 sm:$0xff]   ;;  %v6393_v11 = vld [vmem:[#allocation6 + $0x940] ss:$28 sps:$4 sm:$0xff]  }
 0x260   : > { %v5436_v26 = vpack.c.bf16 %v3807_v42, %v3800_v13  ;;  %v3728_v27 = vmax.f32 %v5604_v14, 0.0  ;;  %v5606_v28 = vadd.f32 %v3090_v23, %v824_v61  ;;  %v5511_v61 = vpop.f32.mrb[15].mxu1  ;;  %v6401_v12 = vld [vmem:[#allocation6 + $0x97c] ss:$28 sps:$4 sm:$0xff]   ;;  %v6402_v42 = vld [vmem:[#allocation9 + $0x120] ss:$8 sps:$4 sm:$0xff]  }
 0x261   : > { %v3785_v31 = vsub.f32 %v3727_v22, %v7208_v54  ;;  %v3734_v32 = vmax.f32 %v5605_v6, 0.0  ;;  %vm7251_vm8 = vcmp.gt.f32.partialorder %v3727_v22, 0.0  ;;  %v7278_v47 = vadd.f32 %v5511_v61, %v5510_v36  ;;  %v6410_v14 = vld [vmem:[#allocation9 + $0x134] ss:$8 sps:$4 sm:$0xff]   ;;  %v6399_v62 = vld [vmem:[#allocation6 + $0x978] ss:$28 sps:$4 sm:$0xff]  }
 0x262   : > { %v3786_v37 = vsub.f32 %v3728_v27, %v7208_v54  ;;  %v3735_v38 = vmax.f32 %v5606_v28, 0.0  ;;  %3428 = vmatpush1.bf16.msra.mxu0 %v6384_v19  ;;  %5437 = vmatprep.mubr.msk.bf16.mxu1 %vm5435_vm7, %v5436_v26  ;;  %vm7265_vm10 = vcmp.gt.f32.partialorder %v3728_v27, 0.0  ;;  %v6407_v19 = vld [vmem:[#allocation6 + $0x9b4] ss:$28 sps:$4 sm:$0xff]   ;;  %v6413_v23 = vld [vmem:[#allocation6 + $0x9ec] ss:$28 sps:$4 sm:$0xff]  }
 0x263   : > { %vm7255_vm9 = vcmp.gt.f32.partialorder %v3734_v32, 0.0  ;;  %v3792_v43 = vsub.f32 %v3734_v32, %v7208_v54  ;;  %5440 = vmatmul.mubr.msk.bf16.vlgmr.msra.gmra.mrb[36].mxu1 %vm5438_vm5, %v5439_v20  ;;  %3429 = vmatprep.subr.bf16.mxu0 %v6389_v24  ;;  %v3813_v48 = vmax.f32 %v3785_v31, 0.0  ;;  %v6408_v20 = vld [vmem:[#allocation9 + $0x130] ss:$8 sps:$4 sm:$0xff]   ;;  %v6416_v22 = vld [vmem:[#allocation9 + $0x144] ss:$8 sps:$4 sm:$0xff]  }
 0x264   : > { %vm7269_vm11 = vcmp.gt.f32.partialorder %v3735_v38, 0.0  ;;  %v3793_v51 = vsub.f32 %v3735_v38, %v7208_v54  ;;  %4607 = vmatpush1.bf16.msra.mxu1 %v6390_v29  ;;  %vm5444_vm12 = vmpackc.low %vm7255_vm9, %vm7251_vm8  ;;  %v3814_v0 = vmax.f32 %v3786_v37, 0.0  ;;  %v6405_v6 = vld [vmem:[#allocation6 + $0x9b0] ss:$28 sps:$4 sm:$0xff]   ;;  %v843_v24 = vsub.s32 6, %v7194_v58  ;;  %v5529_v37 = vpop.f32.mrb[16].mxu1 }
 0x265   : > { %v3820_v57 = vmax.f32 %v3792_v43, 0.0  ;;  %4608 = vmatprep.subr.bf16.mxu1 %v6398_v33  ;;  %vm5441_vm13 = vmpackc.low %vm7269_vm11, %vm7265_vm10  ;;  %v6422_v26 = vld [vmem:[#allocation9 + $0x154] ss:$8 sps:$4 sm:$0xff]   ;;  %v6428_v31 = vld [vmem:[#allocation9 + $0x164] ss:$8 sps:$4 sm:$0xff]  }
 0x266   : > { %v3821_v9 = vmax.f32 %v3793_v51, 0.0  ;;  %3430 = vmatpush1.bf16.msra.mxu0 %v6387_v59  ;;  %v6411_v27 = vld [vmem:[#allocation6 + $0x9e8] ss:$28 sps:$4 sm:$0xff]   ;;  %v844_v29 = vrot.slane %v7199_v17, %v843_v24  ;;  %v6417_v32 = vld [vmem:[#allocation6 + $0xa20] ss:$28 sps:$4 sm:$0xff]   ;;  %v5530_v59 = vpop.f32.mrb[17].mxu1 }
 0x267   : > { %v5445_v15 = vpack.c.bf16 %v3820_v57, %v3813_v48  ;;  %3431 = vmatprep.subr.bf16.mxu0 %v6395_v44  ;;  %v6419_v28 = vld [vmem:[#allocation6 + $0xa24] ss:$28 sps:$4 sm:$0xff]   ;;  %v6425_v33 = vld [vmem:[#allocation6 + $0xa5c] ss:$28 sps:$4 sm:$0xff]   ;;  %v6426_v38 = vld [vmem:[#allocation9 + $0x160] ss:$8 sps:$4 sm:$0xff]   ;;  %v5531_v41 = vadd.f32 %v5530_v59, %v5529_v37 }
 0x268   : > { %v5442_v13 = vpack.c.bf16 %v3821_v9, %v3814_v0  ;;  %4609 = vmatpush1.bf16.msra.mxu1 %v6396_v52  ;;  %v3552_v36 = vadd.f32 %v7211_v39, %v844_v29  ;;  %v6434_v61 = vld [vmem:[#allocation9 + $0x174] ss:$8 sps:$4 sm:$0xff]   ;;  %v3555_v40 = vadd.f32 %v7236_v1, %v844_v29  ;;  %v5532_v43 = vpop.f32.mrb[18].mxu1  ;;  %v6423_v44 = vld [vmem:[#allocation6 + $0xa58] ss:$28 sps:$4 sm:$0xff]   ;;  %v3560_v0 = vadd.f32 %v7243_v35, %v844_v29 }
 0x269   : > { %4610 = vmatprep.subr.bf16.mxu1 %v6404_v63  ;;  %v5533_v46 = vpop.f32.mrb[19].mxu1  ;;  %v6432_v39 = vld [vmem:[#allocation9 + $0x170] ss:$8 sps:$4 sm:$0xff]   ;;  %v6440_v48 = vld [vmem:[#allocation9 + $0x184] ss:$8 sps:$4 sm:$0xff]  }
 0x26a   : > { %3432 = vmatpush1.bf16.msra.mxu0 %v6393_v11  ;;  %5443 = vmatprep.mubr.msk.bf16.mxu1 %vm5441_vm13, %v5442_v13  ;;  %v7293_v51 = vadd.f32 %v5531_v41, %v3552_v36  ;;  %v5534_v52 = vadd.f32 %v5533_v46, %v5532_v43  ;;  %v6429_v63 = vld [vmem:[#allocation6 + $0xa90] ss:$28 sps:$4 sm:$0xff]   ;;  %v5535_v9 = vpop.f32.mrb[20].mxu1  ;;  %v3563_v13 = vadd.f32 %v7278_v47, %v844_v29  ;;  %v6441_v47 = vld [vmem:[#allocation6 + $0xb00] ss:$28 sps:$4 sm:$0xff]   ;;  %v827_v29 = vsub.s32 2, %v7194_v58 }
 0x26b   : > { %5446 = vmatmul.mubr.msk.bf16.gmra.mrb[40].mxu1 %vm5444_vm12, %v5445_v15  ;;  %3433 = vmatprep.subr.bf16.mxu0 %v6401_v12  ;;  %v6437_v1 = vld [vmem:[#allocation6 + $0xacc] ss:$28 sps:$4 sm:$0xff]   ;;  %v5536_v15 = vpop.f32.mrb[21].mxu1  ;;  %v6449_v24 = vld [vmem:[#allocation6 + $0xb3c] ss:$28 sps:$4 sm:$0xff]  }
 0x26c   : > { %4611 = vmatpush1.bf16.msra.mxu1 %v6402_v42  ;;  %v7295_v57 = vadd.f32 %v5534_v52, %v3555_v40  ;;  %v6438_v11 = vld [vmem:[#allocation9 + $0x180] ss:$8 sps:$4 sm:$0xff]   ;;  %v6446_v12 = vld [vmem:[#allocation9 + $0x194] ss:$8 sps:$4 sm:$0xff]   ;;  %v5537_v42 = vadd.f32 %v5536_v15, %v5535_v9  ;;  %v813_v36 = vld [vmem:[#allocation6 + $0xc18] sm:$0x11]  ;;  %v7310_v37 = vrot.slane %v7199_v17, %v827_v29 }
 0x26d   : > { %4612 = vmatprep.subr.bf16.mxu1 %v6410_v14  ;;  %v5538_v14 = vpop.f32.mrb[22].mxu1  ;;  %v6467_v40 = vld [vmem:[#allocation6 + $0xbe4] ss:$28 sps:$4 sm:$0xff]   ;;  %v5313_v41 = vcombine.high %v813_v36, %v813_v36  ;;  %v6475_v52 = vld [vmem:[#allocation9 + $0x1e4] ss:$8 sps:$4 sm:$0xff]  }
 0x26e   : > { %3434 = vmatpush1.bf16.msra.mxu0 %v6399_v62  ;;  %v6435_v62 = vld [vmem:[#allocation6 + $0xac8] ss:$28 sps:$4 sm:$0xff]   ;;  %v7301_v35 = vadd.f32 %v5537_v42, %v3560_v0 }
 0x26f   : > { %3435 = vmatprep.subr.bf16.mxu0 %v6407_v19  ;;  %v5539_v19 = vpop.f32.mrb[23].mxu1  ;;  %v2876_v15 = vand.u32 %v5313_v41, %v7122_v34  ;;  %v6476_v29 = vld [vmem:[#allocation9 + $0x1f0] ss:$8 sps:$4 sm:$0xff]  }
 0x270   : > { %4613 = vmatpush1.bf16.msra.mxu1 %v6408_v20  ;;  %v6443_v20 = vld [vmem:[#allocation6 + $0xb04] ss:$28 sps:$4 sm:$0xff]  }
 0x271   : > { %4614 = vmatprep.subr.bf16.mxu1 %v6416_v22  ;;  %v5540_v22 = vadd.f32 %v5539_v19, %v5538_v14  ;;  %v6473_v14 = vld [vmem:[#allocation9 + $0x1e0] ss:$8 sps:$4 sm:$0xff]  }
 0x272   : > { %3436 = vmatpush1.bf16.msra.mxu0 %v6405_v6  ;;  %v6444_v6 = vld [vmem:[#allocation9 + $0x190] ss:$8 sps:$4 sm:$0xff]  }
 0x273   : > { %3437 = vmatprep.subr.bf16.mxu0 %v6413_v23  ;;  %v7303_v23 = vadd.f32 %v5540_v22, %v3563_v13  ;;  %v6478_v22 = vld [vmem:[#allocation9 + $0x1f4] ss:$8 sps:$4 sm:$0xff]  }
 0x274   : > { %4615 = vmatpush1.bf16.msra.mxu1 %v6414_v25  ;;  %v6450_v25 = vld [vmem:[#allocation9 + $0x1a0] ss:$8 sps:$4 sm:$0xff]  }
 0x275   : > { %4616 = vmatprep.subr.bf16.mxu1 %v6422_v26  ;;  %v6447_v26 = vld [vmem:[#allocation6 + $0xb38] ss:$28 sps:$4 sm:$0xff]  }
 0x276   : > { %3438 = vmatpush1.bf16.msra.mxu0 %v6411_v27  ;;  %v6455_v27 = vld [vmem:[#allocation6 + $0xb74] ss:$28 sps:$4 sm:$0xff]  }
 0x277   : > { %3439 = vmatprep.subr.bf16.mxu0 %v6419_v28  ;;  %v6456_v28 = vld [vmem:[#allocation9 + $0x1b0] ss:$8 sps:$4 sm:$0xff]  }
 0x278   : > { %4617 = vmatpush1.bf16.msra.mxu1 %v6420_v30  ;;  %v6464_v30 = vld [vmem:[#allocation9 + $0x1c4] ss:$8 sps:$4 sm:$0xff]  }
 0x279   : > { %4618 = vmatprep.subr.bf16.mxu1 %v6428_v31  ;;  %v6453_v31 = vld [vmem:[#allocation6 + $0xb70] ss:$28 sps:$4 sm:$0xff]  }
 0x27a   : > { %3440 = vmatpush1.bf16.msra.mxu0 %v6417_v32  ;;  %v831_v32 = vsub.s32 3, %v7194_v58 }
 0x27b   : > { %3441 = vmatprep.subr.bf16.mxu0 %v6425_v33  ;;  %v6461_v33 = vld [vmem:[#allocation6 + $0xbac] ss:$28 sps:$4 sm:$0xff]  }
 0x27c   : > { %4619 = vmatpush1.bf16.msra.mxu1 %v6426_v38  ;;  %v6470_v38 = vld [vmem:[#allocation9 + $0x1d4] ss:$8 sps:$4 sm:$0xff]   ;;  %v7313_v59 = vrot.slane %v7199_v17, %v831_v32 }
 0x27d   : > { %4620 = vmatprep.subr.bf16.mxu1 %v6434_v61  ;;  %v6459_v61 = vld [vmem:[#allocation6 + $0xba8] ss:$28 sps:$4 sm:$0xff]  }
 0x27e   : > { %3442 = vmatpush1.bf16.msra.mxu0 %v6423_v44  ;;  %v6468_v44 = vld [vmem:[#allocation9 + $0x1d0] ss:$8 sps:$4 sm:$0xff]  }
 0x27f   : > { %3464 = vmatprep.subr.bf16.mxu0 %v6431_v49 }
 0x280   : > { %4621 = vmatpush1.bf16.msra.mxu1 %v6432_v39 }
 0x281   : > { %3444 = vmatmul.mubr.bf16.vlgmr.msra.gmra.mrb[16].mxu0 %v7109_v2  ;;  %4622 = vmatprep.subr.bf16.mxu1 %v6440_v48  ;;  %v6452_v2 = vld [vmem:[#allocation9 + $0x1a4] ss:$8 sps:$4 sm:$0xff]  }
 0x282   : > { %3465 = vmatpush1.bf16.msra.mxu0 %v6429_v63  ;;  %3453 = vmatprep.mubr.bf16.mxu0 %v7111_v5  ;;  %v6458_v5 = vld [vmem:[#allocation9 + $0x1b4] ss:$8 sps:$4 sm:$0xff]  }
 0x283   : > { %3466 = vmatprep.subr.bf16.mxu0 %v6437_v1  ;;  %v6465_v63 = vld [vmem:[#allocation6 + $0xbe0] ss:$28 sps:$4 sm:$0xff]   ;;  %v5312_v1 = vcombine.low %v813_v36, %v813_v36  ;;  %v6481_v36 = vld [vmem:[#allocation9 + $0x204] ss:$8 sps:$4 sm:$0xff]  }
 0x284   : > { %4623 = vmatpush1.bf16.msra.mxu1 %v6438_v11 }
 0x285   : > { %4624 = vmatprep.subr.bf16.mxu1 %v6446_v12  ;;  %v5557_v12 = vpop.f32.mrb[24].mxu1 }
 0x286   : > { %3467 = vmatpush1.bf16.msra.mxu0 %v6435_v62  ;;  %v5558_v62 = vpop.f32.mrb[25].mxu1 }
 0x287   : > { %3468 = vmatprep.subr.bf16.mxu0 %v6443_v20 }
 0x288   : > { %4625 = vmatpush1.bf16.msra.mxu1 %v6444_v6  ;;  %v5559_v6 = vadd.f32 %v5558_v62, %v5557_v12 }
 0x289   : > { %4626 = vmatprep.subr.bf16.mxu1 %v6452_v2  ;;  %3454 = vmatmul.mubr.bf16.gmra.mrb[20].mxu0 %v7117_v16  ;;  %v6462_v16 = vld [vmem:[#allocation9 + $0x1c0] ss:$8 sps:$4 sm:$0xff]   ;;  %v5560_v2 = vpop.f32.mrb[26].mxu1 }
 0x28a   : > { %3469 = vmatpush1.bf16.msra.mxu0 %v6441_v47  ;;  %3496 = vmatprep.mubr.bf16.mxu0 %v6780_v21 }
 0x28b   : > { %3470 = vmatprep.subr.bf16.mxu0 %v6449_v24  ;;  %v2873_v24 = vand.u32 %v5312_v1, %v7122_v34 }
 0x28c   : > { %4627 = vmatpush1.bf16.msra.mxu1 %v6450_v25  ;;  %v5561_v25 = vpop.f32.mrb[27].mxu1 }
 0x28d   : > { %4628 = vmatprep.subr.bf16.mxu1 %v6458_v5  ;;  %v6482_v5 = vld [vmem:[#allocation9 + $0x210] ss:$8 sps:$4 sm:$0xff]  }
 0x28e   : > { %3471 = vmatpush1.bf16.msra.mxu0 %v6447_v26 }
 0x28f   : > { %3472 = vmatprep.subr.bf16.mxu0 %v6455_v27 }
 0x290   : > { %4629 = vmatpush1.bf16.msra.mxu1 %v6456_v28 }
 0x291   : > { %4630 = vmatprep.subr.bf16.mxu1 %v6464_v30 }
 0x292   : > { %3473 = vmatpush1.bf16.msra.mxu0 %v6453_v31  ;;  %v6493_v31 = vld [vmem:[#allocation9 + $0x244] ss:$8 sps:$4 sm:$0xff]  }
 0x293   : > { %3474 = vmatprep.subr.bf16.mxu0 %v6461_v33 }
 0x294   : > { %v3127_v43 = vpop.f32.mrb[8].mxu0  ;;  %4631 = vmatpush1.bf16.msra.mxu1 %v6462_v16 }
 0x295   : > { %v3128_v46 = vadd.f32 %v3127_v43, %v7310_v37  ;;  %v3129_v49 = vpop.f32.mrb[9].mxu0  ;;  %4632 = vmatprep.subr.bf16.mxu1 %v6470_v38 }
 0x296   : > { %v3130_v39 = vadd.f32 %v3129_v49, %v7313_v59  ;;  %v3131_v48 = vpop.f32.mrb[10].mxu0  ;;  %3475 = vmatpush1.bf16.msra.mxu0 %v6459_v61 }
 0x297   : > { %v3132_v0 = vadd.f32 %v3131_v48, %v7310_v37  ;;  %v5608_v9 = vadd.f32 %v7176_v53, %v3128_v46  ;;  %v3133_v11 = vpop.f32.mrb[11].mxu0  ;;  %3476 = vmatprep.subr.bf16.mxu0 %v6467_v40 }
 0x298   : > { %v3134_v13 = vadd.f32 %v3133_v11, %v7313_v59  ;;  %v5610_v42 = vadd.f32 %v7178_v55, %v3130_v39  ;;  %4633 = vmatpush1.bf16.msra.mxu1 %v6468_v44 }
 0x299   : > { %v3715_v19 = vmax.f32 %v5608_v9, 0.0  ;;  %v5612_v20 = vadd.f32 %v7180_v56, %v3132_v0  ;;  %4634 = vmatprep.subr.bf16.mxu1 %v6475_v52  ;;  %v5562_v56 = vadd.f32 %v5561_v25, %v5560_v2  ;;  %v5563_v52 = vpop.f32.mrb[28].mxu1 }
 0x29a   : > { %v3716_v53 = vmax.f32 %v5610_v42, 0.0  ;;  %v5614_v47 = vadd.f32 %v7182_v60, %v3134_v13  ;;  %3477 = vmatpush1.bf16.msra.mxu0 %v6465_v63  ;;  %v7332_v60 = vadd.f32 %v5559_v6, %v7293_v51  ;;  %v5564_v9 = vpop.f32.mrb[29].mxu1 }
 0x29b   : > { %vm7325_vm14 = vcmp.gt.f32.partialorder %v3715_v19, 0.0  ;;  %v3773_v55 = vsub.f32 %v3715_v19, %v7208_v54  ;;  %v3722_v26 = vmax.f32 %v5612_v20, 0.0  ;;  %3478 = vmatprep.subr.bf16.mxu0 %v2876_v15  ;;  %v7361_v39 = vadd.f32 %v5562_v56, %v7295_v57  ;;  %v5566_v12 = vpop.f32.mrb[30].mxu1  ;;  %v6514_v20 = vld [vmem:[#allocation9 + $0x2b4] ss:$8 sps:$4 sm:$0xff]  }
 0x29c   : > { %v3774_v27 = vsub.f32 %v3716_v53, %v7208_v54  ;;  %v3723_v28 = vmax.f32 %v5614_v47, 0.0  ;;  %4635 = vmatpush1.bf16.msra.mxu1 %v6473_v14  ;;  %v3137_v30 = vpop.f32.mrb[12].mxu0  ;;  %vm7340_vm0 = vcmp.gt.f32.partialorder %v3716_v53, 0.0  ;;  %v5565_v15 = vadd.f32 %v5564_v9, %v5563_v52  ;;  %v6479_v14 = vld [vmem:[#allocation9 + $0x200] ss:$8 sps:$4 sm:$0xff]  }
 0x29d   : > { %v3801_v34 = vmax.f32 %v3773_v55, 0.0  ;;  %vm7334_vm15 = vcmp.gt.f32.partialorder %v3722_v26, 0.0  ;;  %v3780_v32 = vsub.f32 %v3722_v26, %v7208_v54  ;;  %4636 = vmatprep.subr.bf16.mxu1 %v6478_v22  ;;  %v3138_v33 = vadd.f32 %v3137_v30, %v7310_v37  ;;  %v3139_v16 = vpop.f32.mrb[13].mxu0  ;;  %v6490_v30 = vld [vmem:[#allocation9 + $0x234] ss:$8 sps:$4 sm:$0xff]  }
 0x29e   : > { %vm5450_vm2 = vmpackc.low %vm7334_vm15, %vm7325_vm14  ;;  %vm7348_vm3 = vcmp.gt.f32.partialorder %v3723_v28, 0.0  ;;  %v3781_v61 = vsub.f32 %v3723_v28, %v7208_v54  ;;  %3479 = vmatpush1.bf16.msra.mxu0 %v2873_v24  ;;  %v3140_v40 = vadd.f32 %v3139_v16, %v7313_v59  ;;  %v3141_v41 = vpop.f32.mrb[14].mxu0  ;;  %v3802_v48 = vmax.f32 %v3774_v27, 0.0  ;;  %v6521_v55 = vld [vmem:[#allocation9 + $0x2e0] ss:$8 sps:$4 sm:$0xff]  }
 0x29f   : > { %v3808_v43 = vmax.f32 %v3780_v32, 0.0  ;;  %vm5447_vm4 = vmpackc.low %vm7348_vm3, %vm7340_vm0  ;;  %v3142_v44 = vadd.f32 %v3141_v41, %v7310_v37  ;;  %v5616_v46 = vadd.f32 %v7184_v4, %v3138_v33  ;;  %v3143_v49 = vpop.f32.mrb[15].mxu0  ;;  %v3658_v6 = vadd.f32 %v5565_v15, %v7301_v35  ;;  %v6491_v32 = vld [vmem:[#allocation9 + $0x240] ss:$8 sps:$4 sm:$0xff]   ;;  %v6494_v33 = vld [vmem:[#allocation9 + $0x250] ss:$8 sps:$4 sm:$0xff]  }
 0x2a0   : > { %v3809_v63 = vmax.f32 %v3781_v61, 0.0  ;;  %4637 = vmatpush1.bf16.msra.mxu1 %v6476_v29  ;;  %v3144_v1 = vadd.f32 %v3143_v49, %v7313_v59  ;;  %v5618_v0 = vadd.f32 %v7186_v7, %v3140_v40  ;;  %v5567_v59 = vpop.f32.mrb[31].mxu1  ;;  %v6485_v29 = vld [vmem:[#allocation9 + $0x220] ss:$8 sps:$4 sm:$0xff]  }
 0x2a1   : > { %v5451_v11 = vpack.c.bf16 %v3808_v43, %v3801_v34  ;;  %5319 = vmatmul.mubr.msk.bf16.vlgmr.msra.gmra.mrb[16].mxu0 %vm2850_vm1, %v7130_v50  ;;  %v3729_v37 = vmax.f32 %v5616_v46, 0.0  ;;  %v5620_v4 = vadd.f32 %v7189_v8, %v3142_v44  ;;  %4659 = vmatprep.subr.bf16.mxu1 %v6481_v36  ;;  %v5568_v19 = vadd.f32 %v5567_v59, %v5566_v12  ;;  %v6484_v8 = vld [vmem:[#allocation9 + $0x214] ss:$8 sps:$4 sm:$0xff]   ;;  %v6488_v34 = vld [vmem:[#allocation9 + $0x230] ss:$8 sps:$4 sm:$0xff]  }
 0x2a2   : > { %v5448_v57 = vpack.c.bf16 %v3809_v63, %v3802_v48  ;;  %3506 = vmatprep.mubr.bf16.mxu0 %v6780_v21  ;;  %v3730_v13 = vmax.f32 %v5618_v0, 0.0  ;;  %v5622_v42 = vadd.f32 %v7192_v10, %v3144_v1  ;;  %v6499_v36 = vld [vmem:[#allocation9 + $0x264] ss:$8 sps:$4 sm:$0xff]   ;;  %v6497_v46 = vld [vmem:[#allocation9 + $0x260] ss:$8 sps:$4 sm:$0xff]  }
 0x2a3   : > { %vm7370_vm5 = vcmp.gt.f32.partialorder %v3729_v37, 0.0  ;;  %v3787_v50 = vsub.f32 %v3729_v37, %v7208_v54  ;;  %v3736_v62 = vmax.f32 %v5620_v4, 0.0  ;;  %v3661_v24 = vadd.f32 %v5568_v19, %v7303_v23  ;;  %v6487_v23 = vld [vmem:[#allocation9 + $0x224] ss:$8 sps:$4 sm:$0xff]   ;;  %v6502_v48 = vld [vmem:[#allocation9 + $0x274] ss:$8 sps:$4 sm:$0xff]  }
 0x2a4   : > { %5449 = vmatprep.mubr.msk.bf16.mxu1 %vm5447_vm4, %v5448_v57  ;;  %vm7380_vm6 = vcmp.gt.f32.partialorder %v3730_v13, 0.0  ;;  %v3788_v10 = vsub.f32 %v3730_v13, %v7208_v54  ;;  %v3737_v22 = vmax.f32 %v5622_v42, 0.0  ;;  %v6500_v4 = vld [vmem:[#allocation9 + $0x270] ss:$8 sps:$4 sm:$0xff]   ;;  %v6505_v57 = vld [vmem:[#allocation9 + $0x284] ss:$8 sps:$4 sm:$0xff]  }
 0x2a5   : > { %5452 = vmatmul.mubr.msk.bf16.vlgmr.msra.gmra.mrb[36].mxu1 %vm5450_vm2, %v5451_v11  ;;  %v3815_v2 = vmax.f32 %v3787_v50, 0.0  ;;  %vm7391_vm7 = vcmp.gt.f32.partialorder %v3736_v62, 0.0  ;;  %v3794_v47 = vsub.f32 %v3736_v62, %v7208_v54  ;;  %v6508_v50 = vld [vmem:[#allocation9 + $0x294] ss:$8 sps:$4 sm:$0xff]   ;;  %v6506_v62 = vld [vmem:[#allocation9 + $0x290] ss:$8 sps:$4 sm:$0xff]  }
 0x2a6   : > { %v3816_v25 = vmax.f32 %v3788_v10, 0.0  ;;  %vm7397_vm8 = vcmp.gt.f32.partialorder %v3737_v22, 0.0  ;;  %v3795_v35 = vsub.f32 %v3737_v22, %v7208_v54  ;;  %vm5456_vm9 = vmpackc.low %vm7391_vm7, %vm7370_vm5  ;;  %4660 = vmatpush1.bf16.msra.mxu1 %v6479_v14  ;;  %v6503_v14 = vld [vmem:[#allocation9 + $0x280] ss:$8 sps:$4 sm:$0xff]   ;;  %v6511_v19 = vld [vmem:[#allocation9 + $0x2a4] ss:$8 sps:$4 sm:$0xff]  }
 0x2a7   : > { %v3822_v26 = vmax.f32 %v3794_v47, 0.0  ;;  %vm5453_vm10 = vmpackc.low %vm7397_vm8, %vm7380_vm6  ;;  %4661 = vmatprep.subr.bf16.mxu1 %v6484_v8  ;;  %v6509_v8 = vld [vmem:[#allocation9 + $0x2a0] ss:$8 sps:$4 sm:$0xff]   ;;  %v6512_v10 = vld [vmem:[#allocation9 + $0x2b0] ss:$8 sps:$4 sm:$0xff]  }
 0x2a8   : > { %v3823_v56 = vmax.f32 %v3795_v35, 0.0  ;;  %v6517_v22 = vld [vmem:[#allocation9 + $0x2c4] ss:$8 sps:$4 sm:$0xff]   ;;  %v6520_v47 = vld [vmem:[#allocation9 + $0x2d4] ss:$8 sps:$4 sm:$0xff]  }
 0x2a9   : > { %5320 = vmatmul.mubr.msk.bf16.gmra.mrb[20].mxu0 %vm2850_vm1, %v7139_v3  ;;  %v5457_v27 = vpack.c.bf16 %v3822_v26, %v3815_v2  ;;  %v6496_v3 = vld [vmem:[#allocation9 + $0x254] ss:$8 sps:$4 sm:$0xff]   ;;  %v6529_v26 = vld [vmem:[#allocation9 + $0x304] ss:$8 sps:$4 sm:$0xff]  }
 0x2aa   : > { %v5454_v28 = vpack.c.bf16 %v3823_v56, %v3816_v25  ;;  %4662 = vmatpush1.bf16.msra.mxu1 %v6482_v5  ;;  %v5597_v16 = vpop.f32.mrb[32].mxu1  ;;  %v6523_v25 = vld [vmem:[#allocation9 + $0x2e4] ss:$8 sps:$4 sm:$0xff]   ;;  %v6526_v35 = vld [vmem:[#allocation9 + $0x2f4] ss:$8 sps:$4 sm:$0xff]   ;;  %v839_v56 = vsub.s32 5, %v7194_v58 }
 0x2ab   : > { %4663 = vmatprep.subr.bf16.mxu1 %v6487_v23  ;;  %v3707_v38 = vadd.f32 %v5597_v16, %v3658_v6  ;;  %v3698_v51 = vpop.f32.mrb[33].mxu1  ;;  %v6515_v6 = vld [vmem:[#allocation9 + $0x2c0] ss:$8 sps:$4 sm:$0xff]   ;;  %v6524_v5 = vld [vmem:[#allocation9 + $0x2f0] ss:$8 sps:$4 sm:$0xff]   ;;  %v835_v23 = vsub.s32 4, %v7194_v58 }
 0x2ac   : > { %5455 = vmatprep.mubr.msk.bf16.mxu1 %vm5453_vm10, %v5454_v28  ;;  %v3699_v61 = vadd.f32 %v3698_v51, %v7332_v60  ;;  %v5598_v40 = vpop.f32.mrb[34].mxu1  ;;  %v840_v28 = vrot.slane %v7199_v17, %v839_v56 }
 0x2ad   : > { %5458 = vmatmul.mubr.msk.bf16.gmra.mrb[40].mxu1 %vm5456_vm9, %v5457_v27  ;;  %v3733_v41 = vmax.f32 %v3707_v38, 0.0  ;;  %v3710_v43 = vadd.f32 %v5598_v40, %v3661_v24  ;;  %v3701_v44 = vpop.f32.mrb[35].mxu1  ;;  %v6518_v24 = vld [vmem:[#allocation9 + $0x2d0] ss:$8 sps:$4 sm:$0xff]   ;;  %v836_v27 = vrot.slane %v7199_v17, %v835_v23 }
 0x2ae   : > { %4664 = vmatpush1.bf16.msra.mxu1 %v6485_v29  ;;  %v3719_v49 = vmax.f32 %v3699_v61, 0.0  ;;  %v3702_v52 = vadd.f32 %v3701_v44, %v7361_v39 }
 0x2af   : > { %4665 = vmatprep.subr.bf16.mxu1 %v6490_v30  ;;  %v3791_v63 = vsub.f32 %v3733_v41, %v7208_v54  ;;  %v3740_v1 = vmax.f32 %v3710_v43, 0.0  ;;  %vm7439_vm13 = vcmp.gt.f32.partialorder %v3733_v41, 0.0 }
 0x2b0   : > { %vm7420_vm1 = vcmp.gt.f32.partialorder %v3719_v49, 0.0  ;;  %v3777_v60 = vsub.f32 %v3719_v49, %v7208_v54  ;;  %v3726_v9 = vmax.f32 %v3702_v52, 0.0 }
 0x2b1   : > { %v3819_v11 = vmax.f32 %v3791_v63, 0.0  ;;  %v3798_v37 = vsub.f32 %v3740_v1, %v7208_v54  ;;  %vm7443_vm14 = vcmp.gt.f32.partialorder %v3740_v1, 0.0 }
 0x2b2   : > { %4666 = vmatpush1.bf16.msra.mxu1 %v6488_v34  ;;  %v3805_v15 = vmax.f32 %v3777_v60, 0.0  ;;  %vm7426_vm11 = vcmp.gt.f32.partialorder %v3726_v9, 0.0  ;;  %v3784_v12 = vsub.f32 %v3726_v9, %v7208_v54  ;;  %vm5474_vm15 = vmpackc.low %vm7443_vm14, %vm7439_vm13 }
 0x2b3   : > { %4667 = vmatprep.subr.bf16.mxu1 %v6493_v31  ;;  %v3826_v13 = vmax.f32 %v3798_v37, 0.0  ;;  %vm5471_vm12 = vmpackc.low %vm7426_vm11, %vm7420_vm1 }
 0x2b4   : > { %v3812_v42 = vmax.f32 %v3784_v12, 0.0 }
 0x2b5   : > { %v7435_v59 = vpack.c.bf16 %v3826_v13, %v3819_v11 }
 0x2b6   : > { %4668 = vmatpush1.bf16.msra.mxu1 %v6491_v32  ;;  %v7437_v7 = vpack.c.bf16 %v3812_v42, %v3805_v15 }
 0x2b7   : > { %4669 = vmatprep.subr.bf16.mxu1 %v6496_v3 }
 0x2ba   : > { %4670 = vmatpush1.bf16.msra.mxu1 %v6494_v33 }
 0x2bb   : > { %4671 = vmatprep.subr.bf16.mxu1 %v6499_v36 }
 0x2be   : > { %4672 = vmatpush1.bf16.msra.mxu1 %v6497_v46 }
 0x2bf   : > { %4673 = vmatprep.subr.bf16.mxu1 %v6502_v48 }
 0x2c2   : > { %4674 = vmatpush1.bf16.msra.mxu1 %v6500_v4 }
 0x2c3   : > { %4675 = vmatprep.subr.bf16.mxu1 %v6505_v57 }
 0x2c6   : > { %4676 = vmatpush1.bf16.msra.mxu1 %v6503_v14 }
 0x2c7   : > { %4677 = vmatprep.subr.bf16.mxu1 %v6508_v50 }
 0x2ca   : > { %4678 = vmatpush1.bf16.msra.mxu1 %v6506_v62 }
 0x2cb   : > { %4679 = vmatprep.subr.bf16.mxu1 %v6511_v19  ;;  %v6527_v19 = vld [vmem:[#allocation9 + $0x300] ss:$8 sps:$4 sm:$0xff]  }
 0x2ce   : > { %4680 = vmatpush1.bf16.msra.mxu1 %v6509_v8 }
 0x2cf   : > { %4681 = vmatprep.subr.bf16.mxu1 %v6514_v20 }
 0x2d2   : > { %4682 = vmatpush1.bf16.msra.mxu1 %v6512_v10  ;;  %v6532_v10 = vld [vmem:[#allocation9 + $0x314] ss:$8 sps:$4 sm:$0xff]  }
 0x2d3   : > { %4683 = vmatprep.subr.bf16.mxu1 %v6517_v22 }
 0x2d6   : > { %4684 = vmatpush1.bf16.msra.mxu1 %v6515_v6 }
 0x2d7   : > { %4685 = vmatprep.subr.bf16.mxu1 %v6520_v47 }
 0x2da   : > { %4686 = vmatpush1.bf16.msra.mxu1 %v6518_v24 }
 0x2db   : > { %4687 = vmatprep.subr.bf16.mxu1 %v6523_v25 }
 0x2de   : > { %4688 = vmatpush1.bf16.msra.mxu1 %v6521_v55 }
 0x2df   : > { %4689 = vmatprep.subr.bf16.mxu1 %v6526_v35 }
 0x2e2   : > { %4690 = vmatpush1.bf16.msra.mxu1 %v6524_v5 }
 0x2e3   : > { %4712 = vmatprep.subr.bf16.mxu1 %v6529_v26  ;;  %v6530_v26 = vld [vmem:[#allocation9 + $0x310] ss:$8 sps:$4 sm:$0xff]  }
 0x374   : > { %v3498_v29 = vpop.f32.mrb[16].mxu0 }
 0x375   : > { %v5623_v30 = vadd.f32 %v3498_v29, %v836_v27  ;;  %v3500_v34 = vpop.f32.mrb[17].mxu0 }
 0x376   : > { %v5624_v31 = vadd.f32 %v3500_v34, %v840_v28  ;;  %v3502_v32 = vpop.f32.mrb[18].mxu0  ;;  %v6533_v34 = vld [vmem:[#allocation9 + $0x320] ss:$8 sps:$4 sm:$0xff]  }
 0x377   : > { %v3717_v3 = vmax.f32 %v5623_v30, 0.0  ;;  %v5625_v33 = vadd.f32 %v3502_v32, %v836_v27  ;;  %v3504_v16 = vpop.f32.mrb[19].mxu0  ;;  %v6536_v32 = vld [vmem:[#allocation9 + $0x330] ss:$8 sps:$4 sm:$0xff]  }
 0x378   : > { %v3718_v36 = vmax.f32 %v5624_v31, 0.0  ;;  %v5626_v38 = vadd.f32 %v3504_v16, %v840_v28  ;;  %v6538_v31 = vld [vmem:[#allocation9 + $0x334] ss:$8 sps:$4 sm:$0xff]  }
 0x379   : > { %v3775_v51 = vsub.f32 %v3717_v3, %v7208_v54  ;;  %v3724_v61 = vmax.f32 %v5625_v33, 0.0  ;;  %vm7457_vm0 = vcmp.gt.f32.partialorder %v3717_v3, 0.0  ;;  %v6541_v3 = vld [vmem:[#allocation9 + $0x344] ss:$8 sps:$4 sm:$0xff]   ;;  %v6539_v33 = vld [vmem:[#allocation9 + $0x340] ss:$8 sps:$4 sm:$0xff]  }
 0x37a   : > { %v3776_v40 = vsub.f32 %v3718_v36, %v7208_v54  ;;  %v3725_v41 = vmax.f32 %v5626_v38, 0.0  ;;  %vm7466_vm3 = vcmp.gt.f32.partialorder %v3718_v36, 0.0  ;;  %v6544_v16 = vld [vmem:[#allocation9 + $0x354] ss:$8 sps:$4 sm:$0xff]   ;;  %v6542_v36 = vld [vmem:[#allocation9 + $0x350] ss:$8 sps:$4 sm:$0xff]  }
 0x37b   : > { %vm7461_vm2 = vcmp.gt.f32.partialorder %v3724_v61, 0.0  ;;  %v3782_v44 = vsub.f32 %v3724_v61, %v7208_v54  ;;  %v3803_v63 = vmax.f32 %v3775_v51, 0.0  ;;  %v6547_v38 = vld [vmem:[#allocation9 + $0x364] ss:$8 sps:$4 sm:$0xff]   ;;  %v6545_v51 = vld [vmem:[#allocation9 + $0x360] ss:$8 sps:$4 sm:$0xff]  }
 0x37c   : > { %vm5462_vm4 = vmpackc.low %vm7461_vm2, %vm7457_vm0  ;;  %vm7474_vm5 = vcmp.gt.f32.partialorder %v3725_v41, 0.0  ;;  %v3783_v52 = vsub.f32 %v3725_v41, %v7208_v54  ;;  %v3508_v48 = vpop.f32.mrb[20].mxu0  ;;  %v3804_v11 = vmax.f32 %v3776_v40, 0.0  ;;  %v6550_v61 = vld [vmem:[#allocation9 + $0x374] ss:$8 sps:$4 sm:$0xff]  }
 0x37d   : > { %v3810_v1 = vmax.f32 %v3782_v44, 0.0  ;;  %v5627_v60 = vadd.f32 %v3508_v48, %v836_v27  ;;  %v3510_v9 = vpop.f32.mrb[21].mxu0  ;;  %vm5459_vm6 = vmpackc.low %vm7474_vm5, %vm7466_vm3  ;;  %v6548_v40 = vld [vmem:[#allocation9 + $0x370] ss:$8 sps:$4 sm:$0xff]   ;;  %v3981_v41 = vld [vmem:[#allocation11] sm:$0x3] }
 0x37e   : > { %v3811_v37 = vmax.f32 %v3783_v52, 0.0  ;;  %v5628_v4 = vadd.f32 %v3510_v9, %v840_v28  ;;  %v3512_v15 = vpop.f32.mrb[22].mxu0  ;;  %v3986_v43 = vrot.slane %v3981_v41, %v819_v45  ;;  %v3990_v39 = vrot.slane %v3981_v41, %v823_v18 }
 0x37f   : > { %v5463_v12 = vpack.c.bf16 %v3810_v1, %v3803_v63  ;;  %v3731_v57 = vmax.f32 %v5627_v60, 0.0  ;;  %v5629_v13 = vadd.f32 %v3512_v15, %v836_v27  ;;  %v3514_v42 = vpop.f32.mrb[23].mxu0  ;;  %v6535_v27 = vld [vmem:[#allocation9 + $0x324] ss:$8 sps:$4 sm:$0xff]  }
 0x380   : > { %v5460_v14 = vpack.c.bf16 %v3811_v37, %v3804_v11  ;;  %v3732_v50 = vmax.f32 %v5628_v4, 0.0  ;;  %v5630_v62 = vadd.f32 %v3514_v42, %v840_v28 }
 0x381   : > { %v3789_v8 = vsub.f32 %v3731_v57, %v7208_v54  ;;  %v3738_v20 = vmax.f32 %v5629_v13, 0.0  ;;  %vm7490_vm7 = vcmp.gt.f32.partialorder %v3731_v57, 0.0 }
 0x382   : > { %v3790_v22 = vsub.f32 %v3732_v50, %v7208_v54  ;;  %v3739_v6 = vmax.f32 %v5630_v62, 0.0  ;;  %5461 = vmatprep.mubr.msk.bf16.mxu1 %vm5459_vm6, %v5460_v14  ;;  %vm7504_vm9 = vcmp.gt.f32.partialorder %v3732_v50, 0.0 }
 0x383   : > { %vm7494_vm8 = vcmp.gt.f32.partialorder %v3738_v20, 0.0  ;;  %v3796_v25 = vsub.f32 %v3738_v20, %v7208_v54  ;;  %5464 = vmatmul.mubr.msk.bf16.vlgmr.msra.gmra.mrb[36].mxu1 %vm5462_vm4, %v5463_v12  ;;  %v3817_v23 = vmax.f32 %v3789_v8, 0.0 }
 0x384   : > { %vm7508_vm10 = vcmp.gt.f32.partialorder %v3739_v6, 0.0  ;;  %v3797_v5 = vsub.f32 %v3739_v6, %v7208_v54  ;;  %4713 = vmatpush1.bf16.msra.mxu1 %v6527_v19  ;;  %vm5468_vm3 = vmpackc.low %vm7494_vm8, %vm7490_vm7  ;;  %v3818_v28 = vmax.f32 %v3790_v22, 0.0 }
 0x385   : > { %v3824_v56 = vmax.f32 %v3796_v25, 0.0  ;;  %4714 = vmatprep.subr.bf16.mxu1 %v6532_v10  ;;  %vm5465_vm0 = vmpackc.low %vm7508_vm10, %vm7504_vm9 }
 0x386   : > { %v3825_v29 = vmax.f32 %v3797_v5, 0.0 }
 0x387   : > { %v5469_v30 = vpack.c.bf16 %v3824_v56, %v3817_v23 }
 0x388   : > { %v5466_v54 = vpack.c.bf16 %v3825_v29, %v3818_v28  ;;  %4715 = vmatpush1.bf16.msra.mxu1 %v6530_v26 }
 0x389   : > { %4716 = vmatprep.subr.bf16.mxu1 %v6535_v27 }
 0x38a   : > { %5467 = vmatprep.mubr.msk.bf16.mxu1 %vm5465_vm0, %v5466_v54 }
 0x38b   : > { %5470 = vmatmul.mubr.msk.bf16.gmra.mrb[40].mxu1 %vm5468_vm3, %v5469_v30 }
 0x38c   : > { %4717 = vmatpush1.bf16.msra.mxu1 %v6533_v34  ;;  %4744 = vmatprep.mubr.bf16.mxu1 %v6780_v21 }
 0x38d   : > { %4718 = vmatprep.subr.bf16.mxu1 %v6538_v31 }
 0x390   : > { %4719 = vmatpush1.bf16.msra.mxu1 %v6536_v32 }
 0x391   : > { %4720 = vmatprep.subr.bf16.mxu1 %v6541_v3 }
 0x394   : > { %4721 = vmatpush1.bf16.msra.mxu1 %v6539_v33 }
 0x395   : > { %4722 = vmatprep.subr.bf16.mxu1 %v6544_v16 }
 0x398   : > { %4723 = vmatpush1.bf16.msra.mxu1 %v6542_v36 }
 0x399   : > { %4724 = vmatprep.subr.bf16.mxu1 %v6547_v38 }
 0x39c   : > { %4725 = vmatpush1.bf16.msra.mxu1 %v6545_v51 }
 0x39d   : > { %4726 = vmatprep.subr.bf16.mxu1 %v6550_v61 }
 0x3a0   : > { %4727 = vmatpush1.bf16.msra.mxu1 %v6548_v40 }
 0x3a3   : > { %5473 = vmatmul.mubr.msk.bf16.vlgmr.msra.gmra.mrb[36].mxu1 %vm5471_vm12, %v7437_v7 }
 0x3a4   : > { %4754 = vmatprep.mubr.bf16.mxu1 %v6780_v21 }
 0x3ab   : > { %5476 = vmatmul.mubr.msk.bf16.gmra.mrb[40].mxu1 %vm5474_vm15, %v7435_v59 }
 0x476   : > { %v4746_v0 = vpop.f32.mrb[36].mxu1 }
 0x477   : > { %v5631_v17 = vadd.f32 %v4746_v0, %v3986_v43  ;;  %v4748_v7 = vpop.f32.mrb[37].mxu1 }
 0x478   : > { %v5632_v44 = vadd.f32 %v4748_v7, %v3990_v39  ;;  %v4750_v21 = vpop.f32.mrb[38].mxu1 }
 0x479   : > { %v4765_v46 = vmax.f32 %v5631_v17, 0.0  ;;  %v5633_v49 = vadd.f32 %v4750_v21, %v3986_v43  ;;  %v4752_v53 = vpop.f32.mrb[39].mxu1 }
 0x47a   : > { %v4766_v2 = vmax.f32 %v5632_v44, 0.0  ;;  %v5634_v52 = vadd.f32 %v4752_v53, %v3990_v39 }
 0x47b   : > { %4773 = vst [vmem:[%s325_s10] sm:$0xff] %v4765_v46  ;;  %v4767_v59 = vmax.f32 %v5633_v49, 0.0 }
 0x47c   : > { %4774 = vst [vmem:[%s325_s10 + $0x8] sm:$0xff] %v4766_v2  ;;  %v4768_v45 = vmax.f32 %v5634_v52, 0.0 }
 0x47d   : > { %4775 = vst [vmem:[%s325_s10 + $0x10] sm:$0xff] %v4767_v59 }
 0x47e   : > { %4776 = vst [vmem:[%s325_s10 + $0x18] sm:$0xff] %v4768_v45  ;;  %v4756_v58 = vpop.f32.mrb[40].mxu1 }
 0x47f   : > { %v5635_v18 = vadd.f32 %v4756_v58, %v3986_v43  ;;  %v4758_v48 = vpop.f32.mrb[41].mxu1 }
 0x480   : > { %v5636_v63 = vadd.f32 %v4758_v48, %v3990_v39  ;;  %v4760_v1 = vpop.f32.mrb[42].mxu1 }
 0x481   : > { %v4769_v60 = vmax.f32 %v5635_v18, 0.0  ;;  %v5637_v9 = vadd.f32 %v4760_v1, %v3986_v43  ;;  %v4762_v11 = vpop.f32.mrb[43].mxu1 }
 0x482   : > { %v4770_v37 = vmax.f32 %v5636_v63, 0.0  ;;  %v5638_v4 = vadd.f32 %v4762_v11, %v3990_v39 }
 0x483   : > { %4777 = vst [vmem:[%s325_s10 + $0x20] sm:$0xff] %v4769_v60  ;;  %v4771_v15 = vmax.f32 %v5637_v9, 0.0 }
 0x484   : > { %4778 = vst [vmem:[%s325_s10 + $0x28] sm:$0xff] %v4770_v37  ;;  %v4772_v12 = vmax.f32 %v5638_v4, 0.0 }
 0x485   : > { %4779 = vst [vmem:[%s325_s10 + $0x30] sm:$0xff] %v4771_v15 }
 0x486   : > { %4780 = vst [vmem:[%s325_s10 + $0x38] sm:$0xff] %v4772_v12 }
 0x487   : > { %6706 = shalt.err (!%p6703_p13)
}
 0x488   : > { %s6707_s19 = scalar_lea.hbm %s7546_s27, 1024  ;;  %s6711_s28 = scalar_lea.hbm %s7596_s6, 2048 }
 0x489   : > { %p6708_p9 = scmp.ne.s32.totalorder %s7546_s27, %s6707_s19  ;;  %p6712_p6 = scmp.lt.u32.totalorder %s7546_s27, %s7596_s6 }
 0x48a   : > { %p6713_p10 = scmp.lt.u32.totalorder %s6711_s28, %s6707_s19  ;;  %p6715_p4 = scmp.lt.u32.totalorder %s6707_s19, %s7546_s27 }
 0x48b   : > { %p6709_p0 = pnand %p6708_p9, %p6988_p8 }
 0x48c   : > { %p6714_p3 = por %p6713_p10, %p6712_p6 }
 0x48d   : > { %p6710_p11 = pneg %p6709_p0 }
 0x48e   : > { %p6716_p5 = por %p6715_p4, %p6714_p3 }
 0x490   : > { %p6717_p7 = pnand %p6716_p5, %p6710_p11 }
 0x492   : > { %6720 = shalt.err (!%p6717_p7)
}
 0x493   : > { %s6782_s18 = smov 256   ;;  %s6783_s7 = smov 16  }
 0x494   : > { %5748 = dma.vmem_to_hbm [thread:$0]  (%p6988_p8), %s7541_s15, 1024, %s7546_s27, %s4782_s0, %s6782_s18, %s6782_s18, %s6783_s7  }
 0x495 PF: > { %s4811_s22 = sand.u32 1, %s6755_s23   ;;  %p7670_p12 = scmp.ne.s32.totalorder %s7601_s29, 0 }
 0x496   : > { %p7671_p2 = scmp.ge.s32.totalorder %s6767_s26, 2  ;;  %s4812_s14 = scalar_lea.sflag [#allocation5], %s4811_s22 }
 0x498   : > { %p5768_p1 = pnand %p7671_p2, %p7670_p12 }
 0x49a   : > { %6750 = dma.done.wait (!%p5768_p1), %s4812_s14, 1024  }
 0x49b   : > { %6752 = vsyncadd (!%p5768_p1), %s4812_s14, 4294966272  ;;  %p22_p13 = scmp.ge.s32.totalorder %s6975_s17, 4   ;;  %s7672_s23 = smov %s6759_s24 }
 0x49c   : > { %s7673_s24 = smov %s6763_s25  ;;  %s7674_s25 = smov %s6984_s20 }
 0x49d   : > { %s7675_s26 = smov %s6975_s17  ;;  %24 = sbr.rel (!%p22_p13) target bundleno = 9 (0x9), region = 105 }
 0x4a4   :  { %4817 = vsyncpa [#allocation4], 1 }
 0x4a5   :  { %4819 = vsyncpa [#allocation4 + $0x1], 1 }
 0x4a6   :  { %4820 = vsyncpa [#allocation7], 1 }
 0x4a7   :  { %4821 = vsyncpa [#allocation10], 1 }
 0x4a8   :  { %4822 = vsyncpa [#allocation5], 1 }
 0x4a9   :  { %4824 = vsyncpa [#allocation5 + $0x1], 1 }

</bundles_post_ra>
